<compile_context>
chip_gen: v6e
topology: v6e:2x2x1
jax: 0.10.0
libtpu: 0.0.40
codegen_flags: <defaults>
</compile_context>

<pallas_src>
import functools

import jax
import jax.numpy as jnp
from jax.experimental import pallas as pl
from jax.experimental.pallas import tpu as pltpu

LN_EPS = 1e-5  # nn.LayerNorm default


def _vmem_limit_bytes():
    """Pick a scoped-VMEM budget per generation (48 MiB v7x, ~100 MiB else)."""
    try:
        kind = jax.devices()[0].device_kind.lower()
    except Exception:  # pragma: no cover - defensive
        kind = ""
    if "v5" in kind or "v6" in kind:
        return 100 * 1024 * 1024   # 128 MiB physical on v5e/v6e
    return 48 * 1024 * 1024        # 64 MiB physical on v7x -> leave headroom


def _round_up(x, m):
    return (x + m - 1) // m * m


def _pick_tile_m(rows, requested):
    """Large row tiles, but keep >= 2 row-grid steps (v7x has 2 TensorCores)."""
    tm = min(requested, rows)
    if rows > 8 and pl.cdiv(rows, tm) < 2:
        tm = _round_up(pl.cdiv(rows, 2), 8)
    return max(8, min(tm, rows))


def _pick_tile_n(dim_out):
    """Lane-dense dim_out tiles: full extent up to 512, else 512 (mult. of 256)."""
    if dim_out <= 512 or dim_out % 128 != 0:
        return dim_out
    return 512


def _ln_block_f32(x_ref, g_ref, b_ref):
    """LayerNorm of the current (tile_m, D) block, computed in f32."""
    x = x_ref[...].astype(jnp.float32)                       # (tm, D)
    inv_d = jnp.float32(1.0 / x.shape[-1])
    # One-pass statistics: var = E[x^2] - mean^2 (single pass over lanes);
    # clamp at 0 to guard against catastrophic cancellation -> rsqrt(NaN).
    s1 = jnp.sum(x, axis=-1, keepdims=True)
    s2 = jnp.sum(x * x, axis=-1, keepdims=True)
    mean = s1 * inv_d
    var = jnp.maximum(s2 * inv_d - mean * mean, 0.0)
    inv = jax.lax.rsqrt(var + LN_EPS)
    g = g_ref[...].astype(jnp.float32)                       # affine in f32
    b = b_ref[...].astype(jnp.float32)
    return (x - mean) * inv * g + b


# --------------------------------------------------------------------------
# Fused kernel: PreNorm(dim, Linear(dim, dim_out))  ==  LN(x) @ W^T + bias
# --------------------------------------------------------------------------
def _prenorm_linear_kernel(x_ref, g_ref, b_ref, w_ref, bias_ref, o_ref, ln_ref):
    # LayerNorm is computed once per row tile (j == 0) into a bf16 VMEM
    # scratch and reused for every dim_out tile of that row block.
    @pl.when(pl.program_id(1) == 0)
    def _():
        ln_ref[...] = _ln_block_f32(x_ref, g_ref, b_ref).astype(ln_ref.dtype)

    acc = jnp.dot(ln_ref[...], w_ref[...],                   # bf16 x bf16 -> f32
                  preferred_element_type=jnp.float32)        # (tm, tn) f32
    o_ref[...] = (acc + bias_ref[...].astype(jnp.float32)).astype(o_ref.dtype)


def prenorm_linear_pallas(x2d, gamma, beta, w_t, bias, *,
                          tile_m=512, tile_n=None):
    """Fused LayerNorm(dim) + Linear: (rows, D) -> (rows, dim_out).

    w_t is W^T with shape (dim_in, dim_out); bias is (1, dim_out).
    The weight is fed to the MXU in bf16; accumulation stays f32.
    """
    rows, dim_in = x2d.shape
    dim_out = w_t.shape[1]
    tile_m = _pick_tile_m(rows, tile_m)
    if tile_n is None:
        tile_n = _pick_tile_n(dim_out)
    grid = (pl.cdiv(rows, tile_m), pl.cdiv(dim_out, tile_n))

    w_bf16 = w_t.astype(jnp.bfloat16)
    bias_f32 = bias.astype(jnp.float32)

    cost = pl.CostEstimate(
        flops=2 * rows * dim_in * dim_out,
        transcendentals=rows,  # one rsqrt per row
        bytes_accessed=(x2d.size * x2d.dtype.itemsize
                        + w_bf16.size * 2
                        + rows * dim_out * x2d.dtype.itemsize),
    )

    return pl.pallas_call(
        _prenorm_linear_kernel,
        out_shape=jax.ShapeDtypeStruct((rows, dim_out), x2d.dtype),
        grid_spec=pltpu.PrefetchScalarGridSpec(
            num_scalar_prefetch=0,
            grid=grid,
            in_specs=[
                pl.BlockSpec((tile_m, dim_in), lambda i, j: (i, 0)),   # x rows
                pl.BlockSpec((1, dim_in), lambda i, j: (0, 0)),        # gamma
                pl.BlockSpec((1, dim_in), lambda i, j: (0, 0)),        # beta
                pl.BlockSpec((dim_in, tile_n), lambda i, j: (0, j)),   # W^T tile
                pl.BlockSpec((1, tile_n), lambda i, j: (0, j)),        # bias tile
            ],
            out_specs=pl.BlockSpec((tile_m, tile_n), lambda i, j: (i, j)),
            scratch_shapes=[pltpu.VMEM((tile_m, dim_in), jnp.bfloat16)],
        ),
        compiler_params=pltpu.CompilerParams(
            dimension_semantics=("parallel", "arbitrary"),
            vmem_limit_bytes=_vmem_limit_bytes()),
        cost_estimate=cost,
    )(x2d, gamma, beta, w_bf16, bias_f32)


# --------------------------------------------------------------------------
# Standalone LayerNorm kernel (generic path: fn is an arbitrary module).
# --------------------------------------------------------------------------
def _layernorm_kernel(x_ref, g_ref, b_ref, o_ref):
    o_ref[...] = _ln_block_f32(x_ref, g_ref, b_ref).astype(o_ref.dtype)


def layernorm_pallas(x2d, gamma, beta, *, tile_rows=1024):
    rows, dim = x2d.shape
    tile_rows = _pick_tile_m(rows, tile_rows)
    grid = (pl.cdiv(rows, tile_rows),)
    return pl.pallas_call(
        _layernorm_kernel,
        out_shape=jax.ShapeDtypeStruct((rows, dim), x2d.dtype),
        grid_spec=pltpu.PrefetchScalarGridSpec(
            num_scalar_prefetch=0,
            grid=grid,
            in_specs=[
                pl.BlockSpec((tile_rows, dim), lambda i: (i, 0)),
                pl.BlockSpec((1, dim), lambda i: (0, 0)),
                pl.BlockSpec((1, dim), lambda i: (0, 0)),
            ],
            out_specs=pl.BlockSpec((tile_rows, dim), lambda i: (i, 0)),
        ),
        compiler_params=pltpu.CompilerParams(
            dimension_semantics=("parallel",),
            vmem_limit_bytes=_vmem_limit_bytes()),
    )(x2d, gamma, beta)


# --------------------------------------------------------------------------
# PreNorm wrappers.
# --------------------------------------------------------------------------
def prenorm_linear_apply(x, gamma, beta, w_t, bias, *, tile_m=512, tile_n=None):
    """Fused PreNorm(dim, Linear): x (B, N, D) -> (B, N, dim_out)."""
    b, n, d = x.shape
    out2d = prenorm_linear_pallas(x.reshape(b * n, d), gamma, beta, w_t, bias,
                                  tile_m=tile_m, tile_n=tile_n)
    return out2d.reshape(b, n, -1)


def prenorm_apply(x, gamma, beta, fn, *, tile_rows=1024):
    """Generic PreNorm: fn(LayerNorm(x)) for an arbitrary wrapped fn.

    # TODO(synk): an arbitrary wrapped `fn` cannot be fused generically (the
    # normalized tensor round-trips HBM); route matmul-like fns through
    # prenorm_linear_apply instead.
    """
    b, n, d = x.shape
    normed = layernorm_pallas(x.reshape(b * n, d), gamma, beta,
                              tile_rows=tile_rows)
    out2d = fn(normed)
    return out2d.reshape(b, n, -1)


if __name__ == "__main__":
    # Small but TPU-friendly shapes: D lane-dense (=128); rows = 512 so the
    # tile picker yields 2 parallel row steps (keeps both v7x cores busy).
    B, N, D = 2, 256, 128
    key = jax.random.PRNGKey(0)
    kx, kw, kb = jax.random.split(key, 3)

    x = jax.random.normal(kx, (B, N, D), dtype=jnp.float32)

    # nn.LayerNorm(dim) default init: weight=1, bias=0.
    gamma = jnp.ones((1, D), dtype=jnp.float32)
    beta = jnp.zeros((1, D), dtype=jnp.float32)

    # Example wrapped fn: Linear(D, D).  PyTorch weight is (out, in); we store
    # its transpose so the kernel computes x @ W^T + b.
    w = jax.random.normal(kw, (D, D), dtype=jnp.float32) * 0.02
    w_t = w.T
    bias = (jax.random.normal(kb, (D,), dtype=jnp.float32) * 0.02).reshape(1, D)

    # Fused path (main).
    out = prenorm_linear_apply(x, gamma, beta, w_t, bias)
    out = jax.block_until_ready(out)

    # Generic (unfused) path, for the arbitrary-fn case.
    lin = functools.partial(
        lambda xs, wt, bb: xs @ wt + bb, wt=w_t, bb=bias)
    out_generic = prenorm_apply(x, gamma, beta, lin)
    out_generic = jax.block_until_ready(out_generic)

    # Reference check in plain JAX (same math as nn.LayerNorm + nn.Linear).
    xm = x - jnp.mean(x, axis=-1, keepdims=True)
    ref_norm = xm * jax.lax.rsqrt(jnp.var(x, axis=-1, keepdims=True) + LN_EPS)
    ref_norm = ref_norm * gamma[0] + beta[0]
    ref = ref_norm @ w.T + bias[0]

    assert out.shape == (B, N, D)
    # Fused path runs the MXU in bf16 (f32 accumulation) -> looser tolerance.
    assert jnp.allclose(out, ref, atol=2e-2, rtol=2e-2)
    assert jnp.allclose(out_generic, ref, atol=1e-4, rtol=1e-4)

    print("KERNEL_OK")
</pallas_src>

<mosaic_0001>
module attributes {stable_mosaic.version = 11 : i64} {
  func.func @_prenorm_linear_kernel(%arg0: i32, %arg1: i32, %arg2: memref<256x128xf32, #tpu.memory_space<vmem>>, %arg3: memref<1x128xf32, #tpu.memory_space<vmem>>, %arg4: memref<1x128xf32, #tpu.memory_space<vmem>>, %arg5: memref<128x128xbf16, #tpu.memory_space<vmem>>, %arg6: memref<1x128xf32, #tpu.memory_space<vmem>>, %arg7: memref<256x128xf32, #tpu.memory_space<vmem>>, %arg8: memref<256x128xbf16, #tpu.memory_space<vmem>>) attributes {dimension_semantics = [#tpu.dimension_semantics<parallel>, #tpu.dimension_semantics<arbitrary>], iteration_bounds = array<i64: 2, 1>, scalar_prefetch = 0 : i64, scratch_operands = 1 : i64, tpu.core_type = #tpu.core_type<tc>, window_params = [{transform_indices = @transform_0, window_bounds = array<i64: 256, 128>}, {pipeline_mode = #tpu.pipeline_mode<synchronous>, transform_indices = @transform_1, window_bounds = array<i64: 1, 128>}, {pipeline_mode = #tpu.pipeline_mode<synchronous>, transform_indices = @transform_2, window_bounds = array<i64: 1, 128>}, {transform_indices = @transform_3, window_bounds = array<i64: 128, 128>}, {transform_indices = @transform_4, window_bounds = array<i64: 1, 128>}, {transform_indices = @transform_5, window_bounds = array<i64: 256, 128>}]} {
    %c0_i32 = arith.constant 0 : i32
    %0 = arith.cmpi eq, %arg1, %c0_i32 : i32
    %1 = arith.extui %0 : i1 to i32
    %c0_i32_0 = arith.constant 0 : i32
    %2 = arith.cmpi ne, %1, %c0_i32_0 : i32
    scf.if %2 {
      %c0_8 = arith.constant 0 : index
      %c0_9 = arith.constant 0 : index
      %10 = vector.load %arg2[%c0_8, %c0_9] : memref<256x128xf32, #tpu.memory_space<vmem>>, vector<256x128xf32>
      %cst_10 = arith.constant dense<0.000000e+00> : vector<256xf32>
      %11 = vector.multi_reduction <add>, %10, %cst_10 [1] : vector<256x128xf32> to vector<256xf32>
      %12 = vector.shape_cast %11 : vector<256xf32> to vector<256x1xf32>
      %13 = arith.mulf %10, %10 : vector<256x128xf32>
      %cst_11 = arith.constant dense<0.000000e+00> : vector<256xf32>
      %14 = vector.multi_reduction <add>, %13, %cst_11 [1] : vector<256x128xf32> to vector<256xf32>
      %15 = vector.shape_cast %14 : vector<256xf32> to vector<256x1xf32>
      %cst_12 = arith.constant 7.812500e-03 : f32
      %16 = vector.broadcast %cst_12 : f32 to vector<256x1xf32>
      %17 = arith.mulf %12, %16 : vector<256x1xf32>
      %cst_13 = arith.constant 7.812500e-03 : f32
      %18 = vector.broadcast %cst_13 : f32 to vector<256x1xf32>
      %19 = arith.mulf %15, %18 : vector<256x1xf32>
      %20 = arith.mulf %17, %17 : vector<256x1xf32>
      %21 = arith.subf %19, %20 : vector<256x1xf32>
      %cst_14 = arith.constant 0.000000e+00 : f32
      %22 = vector.broadcast %cst_14 : f32 to vector<256x1xf32>
      %23 = arith.maximumf %21, %22 : vector<256x1xf32>
      %cst_15 = arith.constant 9.99999974E-6 : f32
      %24 = vector.broadcast %cst_15 : f32 to vector<256x1xf32>
      %25 = arith.addf %23, %24 : vector<256x1xf32>
      %26 = math.rsqrt %25 : vector<256x1xf32>
      %c0_16 = arith.constant 0 : index
      %c0_17 = arith.constant 0 : index
      %27 = vector.load %arg3[%c0_16, %c0_17] : memref<1x128xf32, #tpu.memory_space<vmem>>, vector<1x128xf32>
      %c0_18 = arith.constant 0 : index
      %c0_19 = arith.constant 0 : index
      %28 = vector.load %arg4[%c0_18, %c0_19] : memref<1x128xf32, #tpu.memory_space<vmem>>, vector<1x128xf32>
      %29 = vector.broadcast %17 : vector<256x1xf32> to vector<256x128xf32>
      %30 = arith.subf %10, %29 : vector<256x128xf32>
      %31 = vector.broadcast %26 : vector<256x1xf32> to vector<256x128xf32>
      %32 = arith.mulf %30, %31 : vector<256x128xf32>
      %33 = vector.broadcast %27 : vector<1x128xf32> to vector<256x128xf32>
      %34 = arith.mulf %32, %33 : vector<256x128xf32>
      %35 = vector.broadcast %28 : vector<1x128xf32> to vector<256x128xf32>
      %36 = arith.addf %34, %35 : vector<256x128xf32>
      %37 = arith.truncf %36 : vector<256x128xf32> to vector<256x128xbf16>
      %c0_20 = arith.constant 0 : index
      %c0_21 = arith.constant 0 : index
      %38 = vector.load %arg8[%c0_20, %c0_21] : memref<256x128xbf16, #tpu.memory_space<vmem>>, vector<256x128xbf16>
      tpu.vector_store %arg8[%c0_20, %c0_21], %37 {strides = array<i32>} : memref<256x128xbf16, #tpu.memory_space<vmem>>, vector<256x128xbf16>,
    } else {
    }
    %c0 = arith.constant 0 : index
    %c0_1 = arith.constant 0 : index
    %3 = vector.load %arg8[%c0, %c0_1] : memref<256x128xbf16, #tpu.memory_space<vmem>>, vector<256x128xbf16>
    %c0_2 = arith.constant 0 : index
    %c0_3 = arith.constant 0 : index
    %4 = vector.load %arg5[%c0_2, %c0_3] : memref<128x128xbf16, #tpu.memory_space<vmem>>, vector<128x128xbf16>
    %cst = arith.constant dense<0.000000e+00> : vector<256x128xf32>
    %5 = tpu.matmul %3, %4, %cst {dimension_numbers = #tpu.dot_dimension_numbers<[1], [0], [0], [1], [0, 0, 1, 1], [], []>} : vector<256x128xbf16>, vector<128x128xbf16>, vector<256x128xf32> -> vector<256x128xf32>
    %c0_4 = arith.constant 0 : index
    %c0_5 = arith.constant 0 : index
    %6 = vector.load %arg6[%c0_4, %c0_5] : memref<1x128xf32, #tpu.memory_space<vmem>>, vector<1x128xf32>
    %7 = vector.broadcast %6 : vector<1x128xf32> to vector<256x128xf32>
    %8 = arith.addf %5, %7 : vector<256x128xf32>
    %c0_6 = arith.constant 0 : index
    %c0_7 = arith.constant 0 : index
    %9 = vector.load %arg7[%c0_6, %c0_7] : memref<256x128xf32, #tpu.memory_space<vmem>>, vector<256x128xf32>
    tpu.vector_store %arg7[%c0_6, %c0_7], %8 {strides = array<i32>} : memref<256x128xf32, #tpu.memory_space<vmem>>, vector<256x128xf32>,
    return
  }
  func.func @transform_0(%arg0: i32, %arg1: i32) -> (i32, i32) {
    %c0_i32 = arith.constant 0 : i32
    %c0_i32_0 = arith.constant 0 : i32
    return %arg0, %c0_i32 : i32, i32
  }
  func.func @transform_1(%arg0: i32, %arg1: i32) -> (i32, i32) {
    %c0_i32 = arith.constant 0 : i32
    %c0_i32_0 = arith.constant 0 : i32
    %c0_i32_1 = arith.constant 0 : i32
    return %c0_i32, %c0_i32_0 : i32, i32
  }
  func.func @transform_2(%arg0: i32, %arg1: i32) -> (i32, i32) {
    %c0_i32 = arith.constant 0 : i32
    %c0_i32_0 = arith.constant 0 : i32
    %c0_i32_1 = arith.constant 0 : i32
    return %c0_i32, %c0_i32_0 : i32, i32
  }
  func.func @transform_3(%arg0: i32, %arg1: i32) -> (i32, i32) {
    %c0_i32 = arith.constant 0 : i32
    %c0_i32_0 = arith.constant 0 : i32
    return %c0_i32, %arg1 : i32, i32
  }
  func.func @transform_4(%arg0: i32, %arg1: i32) -> (i32, i32) {
    %c0_i32 = arith.constant 0 : i32
    %c0_i32_0 = arith.constant 0 : i32
    return %c0_i32, %arg1 : i32, i32
  }
  func.func @transform_5(%arg0: i32, %arg1: i32) -> (i32, i32) {
    %c0_i32 = arith.constant 0 : i32
    return %arg0, %arg1 : i32, i32
  }
}

</mosaic_0001>

<bundles_post_ra>
// kernel: tpu_custom_call.1
= control target key start
LH: loop header
LB: loop body
LE: loop exit
PB: predicated region body
PF: predicated region fallthrough
CT: control target
= control target key end

     0   :  { %s2870_s0 = inlined_call_operand.hbm [shape: f32[512,128], index: 0, kind: input, shape index: {}]   ;;  %s2871_s1 = inlined_call_operand.vmem [shape: f32[1,128], index: 1, kind: input, shape index: {}]   ;;  %s2872_s2 = inlined_call_operand.vmem [shape: f32[1,128], index: 2, kind: input, shape index: {}]   ;;  %s2873_s3 = inlined_call_operand.hbm [shape: bf16[128,128], index: 3, kind: input, shape index: {}]   ;;  %s2874_s4 = inlined_call_operand.vmem [shape: f32[1,128], index: 4, kind: input, shape index: {}]   ;;  %s2875_s5 = inlined_call_operand.hbm [shape: f32[512,128], index: 5, kind: output, shape index: {}]  }
   0x1   :  { %2878 = sst [smem:[#allocation13_spill]] %s2873_s3 }
   0x2   :  { %10 = vsyncpa [#allocation4], 0 }
   0x3   :  { %12 = vsyncpa [#allocation4 + $0x1], 0 }
   0x4   :  { %13 = vsyncpa [#allocation7], 0 }
   0x5   :  { %14 = vsyncpa [#allocation5], 0 }
   0x6   :  { %16 = vsyncpa [#allocation5 + $0x1], 0  ;;  %s2179_s18 = smov 0   ;;  %s2181_s19 = smov 0  }
   0x7   :  { %s2183_s20 = smov 0   ;;  %s2185_s21 = smov 0  }
   0x8   :  { %s2187_s22 = smov 0   ;;  %s2189_s23 = smov 0  }
   0x9 LB: > { %s1532_s24 = sadd.s32 4294967295, %s2138_s23   ;;  %s1533_s25 = sadd.s32 4294967294, %s2138_s23   ;;  %s2138_s23 = sphi %s2189_s23, %s22_s23   ;;  %s2134_s22 = sphi %s2187_s22, %s2898_s22   ;;  %s2130_s21 = sphi %s2185_s21, %s2897_s21   ;;  %s2126_s20 = sphi %s2183_s20, %s2896_s20   ;;  %s2122_s19 = sphi %s2181_s19, %s2895_s19   ;;  %s2118_s18 = sphi %s2179_s18, %s2894_s18  }
   0xa   : > { %p54_p0 = scmp.ne.s32.totalorder %s2122_s19, %s2118_s18  ;;  %p2213_p1 = scmp.eq.s32.totalorder %s1532_s24, 0 }
   0xb   : > { %p2217_p2 = scmp.eq.s32.totalorder %s1532_s24, 1  ;;  %p180_p3 = scmp.eq.s32.totalorder %s1533_s25, 1 }
   0xc   : > { %p2223_p4 = por %p2213_p1, %p54_p0  ;;  %p1534_p5 = scmp.ge.s32.totalorder %s2138_s23, 1 }
   0xd   : > { %p2228_p6 = por %p180_p3, %p54_p0  ;;  %p187_p7 = scmp.lt.s32.totalorder %s2138_s23, 3 }
   0xe   : > { %s2881_s28 = scalar_select %p2223_p4, 1, 0 }
   0xf   : > { %s2882_s29 = scalar_select %p2228_p6, 1, 0 }
  0x10   : > { %p2233_p8 = pnand %p1534_p5, %p187_p7  ;;  %s2140_s6 = smov [#allocation6]  }
  0x11   : > { %s207_s7 = sshll.u32 %s2140_s6, 4  ;;  %s34_s9 = sadd.s32 1, %s2134_s22  ;;  %s208_s7 = int_to_ptr.vmem [resolvable:$true] %s207_s7 }
  0x12   : > { %p1834_p9 = pneg %p2233_p8  ;;  %s2011_s10 = scalar_lea.vmem %s208_s7, 1024 }
  0x13   : > { %p2012_p13 = scmp.ne.s32.totalorder %s208_s7, %s2011_s10  ;;  %p2019_p5 = scmp.lt.s32.totalorder %s208_s7, %s208_s7 }
  0x14   : > { %p2242_p11 = pnand %p1834_p9, %p2213_p1  ;;  %p2020_p7 = scmp.lt.s32.totalorder %s2011_s10, %s2011_s10 }
  0x16   : > { %p2002_p12 = pneg %p2242_p11  ;;  %p2021_p6 = por %p2020_p7, %p2019_p5 }
  0x18   : > { %p2014_p0 = pnand %p2012_p13, %p2002_p12 }
  0x1a   : > { %p2015_p3 = pneg %p2014_p0 }
  0x1c   : > { %p2022_p4 = pnand %p2021_p6, %p2015_p3 }
  0x1e   : > { %2025 = shalt.err (!%p2022_p4)
}
  0x1f   : > { %s2141_s11 = smov 64   ;;  %s2142_s12 = smov 4  }
  0x20   : > { %s2885_s3 = sld [smem:[#allocation13_spill]]  ;;  %p36_p6 = scmp.ge.s32.totalorder %s34_s9, 2 }
  0x21   : > { %s41_s15 = sadd.s32 1, %s2126_s20  ;;  %p48_p4 = scmp.ne.s32.totalorder %s2126_s20, %s2122_s19 }
  0x22   : > { %p49_p9 = scmp.eq.s32.totalorder %s2138_s23, 0  ;;  %s2900_s9 = smov (%p36_p6, %s34_s9), 0 }
  0x23   : > { %2886 = sst [smem:[#allocation12_spill]] %s2900_s9  ;;  %p2266_p13 = por %p2217_p2, %p48_p4 }
  0x24   : > { %p2260_p12 = por %p49_p9, %p48_p4  ;;  %s38_s24 = ssub.s32 %s2134_s22, %s2900_s9 }
  0x25   : > { %p1847_p0 = scmp.lt.s32.totalorder %s2138_s23, 2  ;;  %s227_s25 = sand.u32 1, %s2126_s20  }
  0x26   : > { %1837 = dma.hbm_to_vmem [thread:$0]  (!%p2242_p11), %s2885_s3, 1024, %s208_s7, [#allocation7], %s2141_s11, %s2141_s11, %s2142_s12  }
  0x27   : > { %p39_p11 = scmp.eq.s32.totalorder %s38_s24, 0  ;;  %s1538_s6 = sshll.u32 %s227_s25, 8 }
  0x28   : > { %s1609_s8 = sshll.u32 %s2134_s22, 12  ;;  %s231_s13 = scalar_lea.vmem [#allocation3], %s1538_s6 }
  0x29   : > { %s2275_s7 = scalar_select %p39_p11, %s2126_s20, %s41_s15  }
  0x2a   : > { %s237_s12 = scalar_lea.hbm %s2870_s0, %s1609_s8  ;;  %s238_s14 = sshll.u32 %s231_s13, 4  ;;  %s239_s14 = int_to_ptr.vmem [resolvable:$true] %s238_s14 }
  0x2b   : > { %p2283_p2 = pnand %p1847_p0, %p2260_p12  ;;  %s228_s3 = scalar_lea.sflag [#allocation4], %s227_s25 }
  0x2c   : > { %s2039_s24 = scalar_lea.vmem %s239_s14, 4096  ;;  %s2143_s15 = smov [#allocation3]  }
  0x2d   : > { %p2028_p3 = pneg %p2283_p2  ;;  %p2040_p5 = scmp.ne.s32.totalorder %s239_s14, %s2039_s24 }
  0x2e   : > { %s2044_s9 = sshll.u32 %s2143_s15, 4  ;;  %s2045_s9 = int_to_ptr.vmem [resolvable:$false] %s2044_s9 }
  0x2f   : > { %p2042_p7 = pnand %p2040_p5, %p2028_p3  ;;  %s2046_s8 = scalar_lea.vmem %s2045_s9, 8192 }
  0x30   : > { %p2047_p4 = scmp.lt.s32.totalorder %s239_s14, %s2045_s9  ;;  %p2048_p9 = scmp.lt.s32.totalorder %s2046_s8, %s2039_s24 }
  0x31   : > { %p2043_p6 = pneg %p2042_p7 }
  0x32   : > { %p2049_p11 = por %p2048_p9, %p2047_p4 }
  0x34   : > { %p2050_p10 = pnand %p2049_p11, %p2043_p6 }
  0x36   : > { %2053 = shalt.err (!%p2050_p10)
}
  0x37   : > { %s2144_s16 = smov 128   ;;  %s2145_s6 = smov 8  }
  0x38   : > { %1841 = dma.hbm_to_vmem [thread:$0]  (!%p2283_p2), %s237_s12, 4096, %s239_s14, %s228_s3, %s2144_s16, %s2144_s16, %s2145_s6  }
  0x39   : > { %250 = sbr.rel (%p2233_p8) target bundleno = 582 (0x246), region = 40  ;;  %s2294_s25 = sand.u32 (!%p2233_p8), 1, %s2122_s19  }
  0x3a   : > { %s1542_s9 = sshll.u32 (!%p2233_p8), %s2294_s25, 8  ;;  %s253_s10 = scalar_lea.sflag (!%p2233_p8), [#allocation4], %s2294_s25 }
  0x3b   : > { %s2300_s11 = scalar_lea.vmem (!%p2233_p8), [#allocation3], %s1542_s9  ;;  %p2890_p10 = scmp.ne.s32.totalorder (!%p2233_p8), %s2881_s28, 0 }
  0x3e   : > { %2105 = dma.done.wait (%p2890_p10), %s253_s10, 4096  }
  0x3f   : > { %2107 = vsyncadd (%p2890_p10), %s253_s10, 4294963200 }
  0x40   : > { %2109 = dma.done.wait (%p2213_p1), [#allocation7], 1024  }
  0x41   : > { %2111 = vsyncadd (%p2213_p1), [#allocation7], 4294966272  ;;  %v2311_v0 = vld [vmem:[%s2300_s11 + $0x80] sm:$0xff]  ;;  %v2319_v2 = vld [vmem:[%s2300_s11 + $0x88] sm:$0xff]  ;;  %s2750_s14 = scalar_lea.vmem [#allocation8], %s1542_s9  ;;  %s1642_s27 = sshll.u32 %s2130_s21, 12 }
  0x42   : > { %v2314_v1 = vld [vmem:[%s2300_s11] sm:$0xff]  ;;  %364 = vadd.xlane.f32.xlu1 %v2311_v0  ;;  %v2322_v3 = vld [vmem:[%s2300_s11 + $0x8] sm:$0xff]  ;;  %v2327_v4 = vld [vmem:[%s2300_s11 + $0x18] sm:$0xff]  ;;  %v413_v10 = vmul.f32 %v2319_v2, %v2319_v2  ;;  %v412_v11 = vmul.f32 %v2311_v0, %v2311_v0  ;;  %s1425_s24 = sshll.u32 %s2750_s14, 4  ;;  %s2817_s16 = scalar_lea.hbm %s2875_s5, %s1642_s27  ;;  %s2819_s24 = int_to_ptr.vmem [resolvable:$true] %s1425_s24 }
  0x43   : > { %332 = vadd.xlane.f32.xlu0 %v2314_v1  ;;  %v2330_v5 = vld [vmem:[%s2300_s11 + $0x10] sm:$0xff]  ;;  %v2335_v6 = vld [vmem:[%s2300_s11 + $0x98] sm:$0xff]  ;;  %v397_v8 = vmul.f32 %v2322_v3, %v2322_v3  ;;  %v396_v9 = vmul.f32 %v2314_v1, %v2314_v1  ;;  %v399_v12 = vmul.f32 %v2327_v4, %v2327_v4  ;;  %v2359_v16 = vld [vmem:[%s2300_s11 + $0x28] sm:$0xff]  ;;  %s1411_s21 = scalar_lea.sflag [#allocation5], %s2294_s25  ;;  %s2054_s6 = scalar_lea.vmem %s2819_s24, 4096 }
  0x44   : > { %v2338_v7 = vld [vmem:[%s2300_s11 + $0x90] sm:$0xff]  ;;  %v398_v13 = vmul.f32 %v2330_v5, %v2330_v5  ;;  %v415_v14 = vmul.f32 %v2335_v6, %v2335_v6  ;;  %v2362_v17 = vld [vmem:[%s2300_s11 + $0x20] sm:$0xff]  ;;  %v2367_v18 = vld [vmem:[%s2300_s11 + $0xa8] sm:$0xff]  ;;  %v401_v25 = vmul.f32 %v2359_v16, %v2359_v16  ;;  %p2055_p1 = scmp.ne.s32.totalorder %s2819_s24, %s2054_s6  ;;  %s2146_s9 = smov [#allocation8]  }
  0x45   : > { %v414_v15 = vmul.f32 %v2338_v7, %v2338_v7  ;;  %v2370_v19 = vld [vmem:[%s2300_s11 + $0xa0] sm:$0xff]  ;;  %v2375_v20 = vld [vmem:[%s2300_s11 + $0x38] sm:$0xff]  ;;  %v2378_v21 = vld [vmem:[%s2300_s11 + $0x30] sm:$0xff]  ;;  %v400_v26 = vmul.f32 %v2362_v17, %v2362_v17  ;;  %v417_v28 = vmul.f32 %v2367_v18, %v2367_v18  ;;  %s2058_s10 = sshll.u32 %s2146_s9, 4  ;;  %s2059_s10 = int_to_ptr.vmem [resolvable:$false] %s2058_s10 }
  0x46   : > { %366 = vadd.xlane.f32.xlu1 %v2319_v2  ;;  %v1905_v22 = vld [vmem:[#allocation6 + $0x38] sm:$0xff]   ;;  %v2386_v24 = vld [vmem:[%s2300_s11 + $0xb0] sm:$0xff]  ;;  %v416_v29 = vmul.f32 %v2370_v19, %v2370_v19  ;;  %v1907_v30 = vld [vmem:[#allocation6 + $0x28] sm:$0xff]   ;;  %v403_v31 = vmul.f32 %v2375_v20, %v2375_v20  ;;  %v402_v32 = vmul.f32 %v2378_v21, %v2378_v21  ;;  %p2056_p8 = pnand %p2055_p1, %p2266_p13  ;;  %p2061_p0 = scmp.lt.s32.totalorder %s2819_s24, %s2059_s10 }
  0x47   : > { %334 = vadd.xlane.f32.xlu0 %v2322_v3  ;;  %v2383_v23 = vld [vmem:[%s2300_s11 + $0xb8] sm:$0xff]  ;;  %1762 = vmatprep.subr.bf16.mxu0 %v1905_v22  ;;  %v1906_v27 = vld [vmem:[#allocation6 + $0x30] sm:$0xff]   ;;  %v1908_v33 = vld [vmem:[#allocation6 + $0x20] sm:$0xff]   ;;  %v418_v35 = vmul.f32 %v2386_v24, %v2386_v24 }
  0x48   : > { %1810 = vmatprep.subr.bf16.mxu1 %v1905_v22  ;;  %1763 = vmatpush3.bf16.msra.mxu0 %v1905_v22  ;;  %v419_v34 = vmul.f32 %v2383_v23, %v2383_v23  ;;  %v1909_v36 = vld [vmem:[#allocation6 + $0x18] sm:$0xff]   ;;  %v1910_v37 = vld [vmem:[#allocation6 + $0x10] sm:$0xff]   ;;  %v2407_v38 = vld [vmem:[%s2300_s11 + $0x48] sm:$0xff]  ;;  %p2057_p12 = pneg %p2056_p8 }
  0x49   : > { %1818 = vmatpush3.bf16.msra.mxu1 %v1905_v22  ;;  %1764 = vmatprep.subr.bf16.mxu0 %v1906_v27  ;;  %v2410_v39 = vld [vmem:[%s2300_s11 + $0x40] sm:$0xff]  ;;  %v1911_v40 = vld [vmem:[#allocation6 + $0x8] sm:$0xff]   ;;  %v2423_v43 = vld [vmem:[%s2300_s11 + $0x58] sm:$0xff]  ;;  %v405_v48 = vmul.f32 %v2407_v38, %v2407_v38 }
  0x4a   : > { %338 = vadd.xlane.f32.xlu1 %v2327_v4  ;;  %1811 = vmatprep.subr.bf16.mxu1 %v1906_v27  ;;  %v2415_v41 = vld [vmem:[%s2300_s11 + $0xc8] sm:$0xff]  ;;  %v2418_v42 = vld [vmem:[%s2300_s11 + $0xc0] sm:$0xff]  ;;  %v2426_v44 = vld [vmem:[%s2300_s11 + $0x50] sm:$0xff]  ;;  %v404_v49 = vmul.f32 %v2410_v39, %v2410_v39  ;;  %v407_v52 = vmul.f32 %v2423_v43, %v2423_v43 }
  0x4b   : > { %336 = vadd.xlane.f32.xlu0 %v2330_v5  ;;  %v1913_v45 = vld [vmem:[#allocation6] sm:$0xff]   ;;  %v2431_v46 = vld [vmem:[%s2300_s11 + $0xd8] sm:$0xff]  ;;  %v2434_v47 = vld [vmem:[%s2300_s11 + $0xd0] sm:$0xff]  ;;  %v421_v50 = vmul.f32 %v2415_v41, %v2415_v41  ;;  %v420_v51 = vmul.f32 %v2418_v42, %v2418_v42  ;;  %v406_v53 = vmul.f32 %v2426_v44, %v2426_v44 }
  0x4c   : > { %1765 = vmatpush3.bf16.msra.mxu0 %v1906_v27  ;;  %v423_v54 = vmul.f32 %v2431_v46, %v2431_v46  ;;  %v422_v55 = vmul.f32 %v2434_v47, %v2434_v47  ;;  %v2455_v56 = vld [vmem:[%s2300_s11 + $0x68] sm:$0xff]  ;;  %v312_v57 = vld [vmem:[%s2300_s11 + $0x60] sm:$0xff]  ;;  %v315_v60 = vld [vmem:[%s2300_s11 + $0x78] sm:$0xff] }
  0x4d   : > { %1819 = vmatpush3.bf16.msra.mxu1 %v1906_v27  ;;  %1766 = vmatprep.subr.bf16.mxu0 %v1907_v30  ;;  %v329_v58 = vld [vmem:[%s2300_s11 + $0xe8] sm:$0xff]  ;;  %v328_v59 = vld [vmem:[%s2300_s11 + $0xe0] sm:$0xff]  ;;  %v314_v61 = vld [vmem:[%s2300_s11 + $0x70] sm:$0xff] }
  0x4e   : > { %370 = vadd.xlane.f32.xlu1 %v2335_v6  ;;  %1812 = vmatprep.subr.bf16.mxu1 %v1907_v30  ;;  %v331_v62 = vld [vmem:[%s2300_s11 + $0xf8] sm:$0xff]  ;;  %v330_v63 = vld [vmem:[%s2300_s11 + $0xf0] sm:$0xff] }
  0x4f   : > { %368 = vadd.xlane.f32.xlu0 %v2338_v7 }
  0x50   : > { %1767 = vmatpush3.bf16.msra.mxu0 %v1907_v30 }
  0x51   : > { %1820 = vmatpush3.bf16.msra.mxu1 %v1907_v30  ;;  %1768 = vmatprep.subr.bf16.mxu0 %v1908_v33 }
  0x52   : > { %430 = vadd.xlane.f32.xlu1 %v397_v8  ;;  %1813 = vmatprep.subr.bf16.mxu1 %v1908_v33  ;;  %v409_v8 = vmul.f32 %v2455_v56, %v2455_v56 }
  0x53   : > { %428 = vadd.xlane.f32.xlu0 %v396_v9  ;;  %v408_v9 = vmul.f32 %v312_v57, %v312_v57 }
  0x54   : > { %1769 = vmatpush3.bf16.msra.mxu0 %v1908_v33 }
  0x55   : > { %1821 = vmatpush3.bf16.msra.mxu1 %v1908_v33  ;;  %1770 = vmatprep.subr.bf16.mxu0 %v1909_v36 }
  0x56   : > { %462 = vadd.xlane.f32.xlu1 %v413_v10  ;;  %1814 = vmatprep.subr.bf16.mxu1 %v1909_v36  ;;  %v425_v10 = vmul.f32 %v329_v58, %v329_v58 }
  0x57   : > { %460 = vadd.xlane.f32.xlu0 %v412_v11  ;;  %v424_v11 = vmul.f32 %v328_v59, %v328_v59 }
  0x58   : > { %1771 = vmatpush3.bf16.msra.mxu0 %v1909_v36 }
  0x59   : > { %1822 = vmatpush3.bf16.msra.mxu1 %v1909_v36  ;;  %1772 = vmatprep.subr.bf16.mxu0 %v1910_v37 }
  0x5a   : > { %434 = vadd.xlane.f32.xlu1 %v399_v12  ;;  %1815 = vmatprep.subr.bf16.mxu1 %v1910_v37  ;;  %v411_v12 = vmul.f32 %v315_v60, %v315_v60 }
  0x5b   : > { %432 = vadd.xlane.f32.xlu0 %v398_v13  ;;  %v410_v13 = vmul.f32 %v314_v61, %v314_v61 }
  0x5c   : > { %1773 = vmatpush3.bf16.msra.mxu0 %v1910_v37 }
  0x5d   : > { %1823 = vmatpush3.bf16.msra.mxu1 %v1910_v37  ;;  %1774 = vmatprep.subr.bf16.mxu0 %v1911_v40 }
  0x5e   : > { %466 = vadd.xlane.f32.xlu1 %v415_v14  ;;  %1816 = vmatprep.subr.bf16.mxu1 %v1911_v40  ;;  %v427_v14 = vmul.f32 %v331_v62, %v331_v62 }
  0x5f   : > { %464 = vadd.xlane.f32.xlu0 %v414_v15  ;;  %v426_v15 = vmul.f32 %v330_v63, %v330_v63 }
  0x60   : > { %1775 = vmatpush3.bf16.msra.mxu0 %v1911_v40 }
  0x61   : > { %1824 = vmatpush3.bf16.msra.mxu1 %v1911_v40  ;;  %1776 = vmatprep.subr.bf16.mxu0 %v1913_v45 }
  0x62   : > { %342 = vadd.xlane.f32.xlu1 %v2359_v16  ;;  %1817 = vmatprep.subr.bf16.mxu1 %v1913_v45 }
  0x63   : > { %340 = vadd.xlane.f32.xlu0 %v2362_v17 }
  0x64   : > { %1777 = vmatpush3.bf16.msra.mxu0 %v1913_v45 }
  0x65   : > { %1825 = vmatpush3.bf16.msra.mxu1 %v1913_v45 }
  0x66   : > { %374 = vadd.xlane.f32.xlu1 %v2367_v18 }
  0x67   : > { %372 = vadd.xlane.f32.xlu0 %v2370_v19 }
  0x6a   : > { %346 = vadd.xlane.f32.xlu1 %v2375_v20 }
  0x6b   : > { %344 = vadd.xlane.f32.xlu0 %v2378_v21 }
  0x6e   : > { %378 = vadd.xlane.f32.xlu1 %v2383_v23 }
  0x6f   : > { %376 = vadd.xlane.f32.xlu0 %v2386_v24 }
  0x72   : > { %438 = vadd.xlane.f32.xlu1 %v401_v25 }
  0x73   : > { %436 = vadd.xlane.f32.xlu0 %v400_v26 }
  0x76   : > { %470 = vadd.xlane.f32.xlu1 %v417_v28 }
  0x77   : > { %468 = vadd.xlane.f32.xlu0 %v416_v29 }
  0x7a   : > { %442 = vadd.xlane.f32.xlu1 %v403_v31 }
  0x7b   : > { %440 = vadd.xlane.f32.xlu0 %v402_v32 }
  0x7e   : > { %474 = vadd.xlane.f32.xlu1 %v419_v34 }
  0x7f   : > { %472 = vadd.xlane.f32.xlu0 %v418_v35 }
  0x82   : > { %350 = vadd.xlane.f32.xlu1 %v2407_v38 }
  0x83   : > { %348 = vadd.xlane.f32.xlu0 %v2410_v39 }
  0x86   : > { %382 = vadd.xlane.f32.xlu1 %v2415_v41 }
  0x87   : > { %380 = vadd.xlane.f32.xlu0 %v2418_v42 }
  0x8a   : > { %354 = vadd.xlane.f32.xlu1 %v2423_v43 }
  0x8b   : > { %352 = vadd.xlane.f32.xlu0 %v2426_v44 }
  0x8e   : > { %386 = vadd.xlane.f32.xlu1 %v2431_v46 }
  0x8f   : > { %384 = vadd.xlane.f32.xlu0 %v2434_v47 }
  0x92   : > { %446 = vadd.xlane.f32.xlu1 %v405_v48 }
  0x93   : > { %444 = vadd.xlane.f32.xlu0 %v404_v49 }
  0x96   : > { %478 = vadd.xlane.f32.xlu1 %v421_v50 }
  0x97   : > { %476 = vadd.xlane.f32.xlu0 %v420_v51 }
  0x9a   : > { %450 = vadd.xlane.f32.xlu1 %v407_v52 }
  0x9b   : > { %448 = vadd.xlane.f32.xlu0 %v406_v53 }
  0x9e   : > { %482 = vadd.xlane.f32.xlu1 %v423_v54 }
  0x9f   : > { %480 = vadd.xlane.f32.xlu0 %v422_v55 }
  0xa2   : > { %358 = vadd.xlane.f32.xlu1 %v2455_v56 }
  0xa3   : > { %356 = vadd.xlane.f32.xlu0 %v312_v57 }
  0xa6   : > { %390 = vadd.xlane.f32.xlu1 %v329_v58 }
  0xa7   : > { %388 = vadd.xlane.f32.xlu0 %v328_v59 }
  0xaa   : > { %362 = vadd.xlane.f32.xlu1 %v315_v60 }
  0xab   : > { %360 = vadd.xlane.f32.xlu0 %v314_v61 }
  0xae   : > { %394 = vadd.xlane.f32.xlu1 %v331_v62 }
  0xaf   : > { %392 = vadd.xlane.f32.xlu0 %v330_v63 }
  0xb2   : > { %454 = vadd.xlane.f32.xlu1 %v409_v8 }
  0xb3   : > { %452 = vadd.xlane.f32.xlu0 %v408_v9 }
  0xb6   : > { %486 = vadd.xlane.f32.xlu1 %v425_v10 }
  0xb7   : > { %484 = vadd.xlane.f32.xlu0 %v424_v11 }
  0xba   : > { %458 = vadd.xlane.f32.xlu1 %v411_v12 }
  0xbb   : > { %456 = vadd.xlane.f32.xlu0 %v410_v13 }
  0xbe   : > { %490 = vadd.xlane.f32.xlu1 %v427_v14 }
  0xbf   : > { %488 = vadd.xlane.f32.xlu0 %v426_v15 }
  0xcb   : > { %v365_v22 = vpop.xlane.xlu1 %364 }
  0xcc   : > { %v333_v25 = vpop.xlane.xlu0 %332  ;;  %v2471_v34 = vmul.f32 0.0078125, %v365_v22 }
  0xcd   : > { %v2467_v32 = vmul.f32 0.0078125, %v333_v25 }
  0xce   : > { %v572_v52 = vmul.f32 %v2471_v34, %v2471_v34 }
  0xcf   : > { %v367_v26 = vpop.xlane.xlu1 %366  ;;  %v556_v40 = vmul.f32 %v2467_v32, %v2467_v32 }
  0xd0   : > { %v335_v27 = vpop.xlane.xlu0 %334  ;;  %v2473_v35 = vmul.f32 0.0078125, %v367_v26 }
  0xd1   : > { %v2469_v33 = vmul.f32 0.0078125, %v335_v27 }
  0xd2   : > { %v573_v53 = vmul.f32 %v2473_v35, %v2473_v35 }
  0xd3   : > { %v339_v28 = vpop.xlane.xlu1 %338  ;;  %v557_v45 = vmul.f32 %v2469_v33, %v2469_v33 }
  0xd4   : > { %v337_v29 = vpop.xlane.xlu0 %336  ;;  %v2483_v54 = vmul.f32 0.0078125, %v339_v28 }
  0xd5   : > { %v2485_v62 = vmul.f32 0.0078125, %v337_v29 }
  0xd6   : > { %v559_v11 = vmul.f32 %v2483_v54, %v2483_v54 }
  0xd7   : > { %v371_v30 = vpop.xlane.xlu1 %370  ;;  %v558_v27 = vmul.f32 %v2485_v62, %v2485_v62 }
  0xd8   : > { %v369_v31 = vpop.xlane.xlu0 %368  ;;  %v2489_v12 = vmul.f32 0.0078125, %v371_v30 }
  0xd9   : > { %v2491_v13 = vmul.f32 0.0078125, %v369_v31 }
  0xda   : > { %v575_v30 = vmul.f32 %v2489_v12, %v2489_v12 }
  0xdb   : > { %v431_v36 = vpop.xlane.xlu1 %430  ;;  %v574_v31 = vmul.f32 %v2491_v13, %v2491_v13 }
  0xdc   : > { %v429_v37 = vpop.xlane.xlu0 %428  ;;  %v525_v48 = vmul.f32 0.0078125, %v431_v36 }
  0xdd   : > { %v524_v49 = vmul.f32 0.0078125, %v429_v37 }
  0xde   : > { %v589_v50 = vsub.f32 %v525_v48, %v557_v45 }
  0xdf   : > { %v588_v51 = vsub.f32 %v524_v49, %v556_v40  ;;  %v463_v55 = vpop.xlane.xlu1 %462 }
  0xe0   : > { %v461_v57 = vpop.xlane.xlu0 %460  ;;  %v621_v58 = vmax.f32 %v589_v50, 0.0  ;;  %v541_v60 = vmul.f32 0.0078125, %v463_v55 }
  0xe1   : > { %v620_v59 = vmax.f32 %v588_v51, 0.0  ;;  %v540_v61 = vmul.f32 0.0078125, %v461_v57 }
  0xe2   : > { %v653_v63 = vadd.f32 1e-05, %v621_v58  ;;  %v605_v9 = vsub.f32 %v541_v60, %v573_v53 }
  0xe3   : > { %v652_v8 = vadd.f32 1e-05, %v620_v59  ;;  %v604_v10 = vsub.f32 %v540_v61, %v572_v52  ;;  %v435_v14 = vpop.xlane.xlu1 %434 }
  0xe4   : > { %v433_v15 = vpop.xlane.xlu0 %432  ;;  %1929 = vrsqrt.f32 %v653_v63  ;;  %v637_v22 = vmax.f32 %v605_v9, 0.0  ;;  %v527_v26 = vmul.f32 0.0078125, %v435_v14  ;;  %v719_v14 = vsub.f32 %v2322_v3, %v2469_v33 }
  0xe5   : > { %v636_v25 = vmax.f32 %v604_v10, 0.0  ;;  %1931 = vrsqrt.f32 %v652_v8  ;;  %v526_v28 = vmul.f32 0.0078125, %v433_v15 }
  0xe6   : > { %v669_v29 = vadd.f32 1e-05, %v637_v22  ;;  %v591_v37 = vsub.f32 %v527_v26, %v559_v11  ;;  %v718_v22 = vsub.f32 %v2314_v1, %v2467_v32 }
  0xe7   : > { %v668_v36 = vadd.f32 1e-05, %v636_v25  ;;  %v590_v40 = vsub.f32 %v526_v28, %v558_v27  ;;  %v467_v45 = vpop.xlane.xlu1 %466  ;;  %v2506_v25 = vld [vmem:[%s2871_s1] ss:$0 sm:$0xff] }
  0xe8   : > { %v465_v48 = vpop.xlane.xlu0 %464  ;;  %1933 = vrsqrt.f32 %v669_v29  ;;  %v623_v49 = vmax.f32 %v591_v37, 0.0  ;;  %v543_v50 = vmul.f32 0.0078125, %v467_v45  ;;  %v2511_v28 = vld [vmem:[%s2872_s2] ss:$0 sm:$0xff]  ;;  %v734_v37 = vsub.f32 %v2311_v0, %v2471_v34 }
  0xe9   : > { %v542_v51 = vmul.f32 0.0078125, %v465_v48  ;;  %1935 = vrsqrt.f32 %v668_v36  ;;  %v622_v52 = vmax.f32 %v590_v40, 0.0  ;;  %v735_v36 = vsub.f32 %v2319_v2, %v2473_v35 }
  0xea   : > { %v655_v53 = vadd.f32 1e-05, %v623_v49  ;;  %v607_v55 = vsub.f32 %v543_v50, %v575_v30  ;;  %v721_v2 = vsub.f32 %v2327_v4, %v2483_v54  ;;  %v736_v4 = vsub.f32 %v2338_v7, %v2491_v13 }
  0xeb   : > { %v606_v57 = vsub.f32 %v542_v51, %v574_v31  ;;  %v654_v58 = vadd.f32 1e-05, %v622_v52  ;;  %v343_v59 = vpop.xlane.xlu1 %342 }
  0xec   : > { %v341_v60 = vpop.xlane.xlu0 %340  ;;  %1937 = vrsqrt.f32 %v655_v53  ;;  %v639_v61 = vmax.f32 %v607_v55, 0.0  ;;  %v2521_v50 = vmul.f32 0.0078125, %v343_v59  ;;  %v720_v53 = vsub.f32 %v2330_v5, %v2485_v62 }
  0xed   : > { %v638_v63 = vmax.f32 %v606_v57, 0.0  ;;  %1939 = vrsqrt.f32 %v654_v58  ;;  %v2528_v0 = vmul.f32 0.0078125, %v341_v60 }
  0xee   : > { %v671_v8 = vadd.f32 1e-05, %v639_v61  ;;  %v737_v61 = vsub.f32 %v2335_v6, %v2489_v12  ;;  %v561_v5 = vmul.f32 %v2521_v50, %v2521_v50 }
  0xef   : > { %v670_v9 = vadd.f32 1e-05, %v638_v63  ;;  %v375_v10 = vpop.xlane.xlu1 %374  ;;  %v560_v6 = vmul.f32 %v2528_v0, %v2528_v0 }
  0xf0   : > { %v373_v11 = vpop.xlane.xlu0 %372  ;;  %1941 = vrsqrt.f32 %v671_v8  ;;  %v2533_v58 = vmul.f32 0.0078125, %v375_v10 }
  0xf1   : > { %v1930_v15 = vpop.eup %1929  ;;  %1943 = vrsqrt.f32 %v670_v9  ;;  %v2543_v62 = vmul.f32 0.0078125, %v373_v11 }
  0xf2   : > { %v1932_v26 = vpop.eup %1931  ;;  %v751_v27 = vmul.f32 %v1930_v15, %v719_v14 }
  0xf3   : > { %v750_v29 = vmul.f32 %v1932_v26, %v718_v22  ;;  %v347_v3 = vpop.xlane.xlu1 %346  ;;  %v577_v26 = vmul.f32 %v2533_v58, %v2533_v58 }
  0xf4   : > { %v345_v33 = vpop.xlane.xlu0 %344  ;;  %v789_v1 = vmul.f32 %v2506_v25, %v751_v27  ;;  %v2551_v27 = vmul.f32 0.0078125, %v347_v3 }
  0xf5   : > { %v1934_v32 = vpop.eup %1933  ;;  %v788_v30 = vmul.f32 %v2506_v25, %v750_v29 }
  0xf6   : > { %v1936_v31 = vpop.eup %1935  ;;  %v827_v40 = vadd.f32 %v2511_v28, %v789_v1  ;;  %v767_v45 = vmul.f32 %v1934_v32, %v735_v36 }
  0xf7   : > { %v826_v48 = vadd.f32 %v2511_v28, %v788_v30  ;;  %v766_v49 = vmul.f32 %v1936_v31, %v734_v37  ;;  %v379_v51 = vpop.xlane.xlu1 %378  ;;  %v576_v31 = vmul.f32 %v2543_v62, %v2543_v62 }
  0xf8   : > { %v2523_v52 = vpop.xlane.xlu0 %376  ;;  %v805_v35 = vmul.f32 %v2506_v25, %v767_v45 }
  0xf9   : > { %v1938_v34 = vpop.eup %1937  ;;  %v1646_v55 = vpack.c.bf16 %v827_v40, %v826_v48  ;;  %v804_v57 = vmul.f32 %v2506_v25, %v766_v49  ;;  %v2557_v40 = vmul.f32 0.0078125, %v345_v33 }
  0xfa   : > { %v1940_v59 = vpop.eup %1939  ;;  %v843_v54 = vadd.f32 %v2511_v28, %v805_v35  ;;  %v753_v60 = vmul.f32 %v1938_v34, %v721_v2 }
  0xfb   : > { %1647 = vst [vmem:[#allocation2] sm:$0xff] %v1646_v55   ;;  %v842_v63 = vadd.f32 %v2511_v28, %v804_v57  ;;  %v752_v8 = vmul.f32 %v1940_v59, %v720_v53  ;;  %v439_v9 = vpop.xlane.xlu1 %438  ;;  %v563_v55 = vmul.f32 %v2551_v27, %v2551_v27 }
  0xfc   : > { %v437_v10 = vpop.xlane.xlu0 %436  ;;  %v791_v14 = vmul.f32 %v2506_v25, %v753_v60  ;;  %v529_v7 = vmul.f32 0.0078125, %v439_v9  ;;  %v562_v60 = vmul.f32 %v2557_v40, %v2557_v40 }
  0xfd   : > { %v528_v12 = vmul.f32 0.0078125, %v437_v10  ;;  %v1942_v13 = vpop.eup %1941  ;;  %v1686_v15 = vpack.c.bf16 %v843_v54, %v842_v63  ;;  %v790_v22 = vmul.f32 %v2506_v25, %v752_v8  ;;  %v2567_v63 = vmul.f32 0.0078125, %v379_v51 }
  0xfe   : > { %v1944_v11 = vpop.eup %1943  ;;  %v829_v29 = vadd.f32 %v2511_v28, %v791_v14  ;;  %v769_v36 = vmul.f32 %v1942_v13, %v737_v61  ;;  %v593_v1 = vsub.f32 %v529_v7, %v561_v5  ;;  %v2570_v13 = vmul.f32 0.0078125, %v2523_v52 }
  0xff   : > { %v592_v32 = vsub.f32 %v528_v12, %v560_v6  ;;  %1730 = vst [vmem:[#allocation2 + $0x40] sm:$0xff] %v1686_v15   ;;  %v828_v37 = vadd.f32 %v2511_v28, %v790_v22  ;;  %v768_v30 = vmul.f32 %v1944_v11, %v736_v4  ;;  %v471_v45 = vpop.xlane.xlu1 %470  ;;  %v579_v51 = vmul.f32 %v2567_v63, %v2567_v63 }
 0x100   : > { %v469_v48 = vpop.xlane.xlu0 %468  ;;  %v807_v3 = vmul.f32 %v2506_v25, %v769_v36  ;;  %v625_v49 = vmax.f32 %v593_v1, 0.0  ;;  %v545_v35 = vmul.f32 0.0078125, %v471_v45  ;;  %v578_v52 = vmul.f32 %v2570_v13, %v2570_v13 }
 0x101   : > { %v624_v2 = vmax.f32 %v592_v32, 0.0  ;;  %v1651_v34 = vpack.c.bf16 %v829_v29, %v828_v37  ;;  %v806_v53 = vmul.f32 %v2506_v25, %v768_v30  ;;  %v544_v57 = vmul.f32 0.0078125, %v469_v48 }
 0x102   : > { %v845_v59 = vadd.f32 %v2511_v28, %v807_v3  ;;  %v657_v61 = vadd.f32 1e-05, %v625_v49  ;;  %v609_v33 = vsub.f32 %v545_v35, %v577_v26  ;;  %v1912_v10 = vld [vmem:[#allocation2] sm:$0xff]  }
 0x103   : > { %v656_v4 = vadd.f32 1e-05, %v624_v2  ;;  %1723 = vst [vmem:[#allocation2 + $0x8] sm:$0xff] %v1651_v34   ;;  %v844_v54 = vadd.f32 %v2511_v28, %v806_v53  ;;  %v608_v8 = vsub.f32 %v544_v57, %v576_v31  ;;  %v443_v5 = vpop.xlane.xlu1 %442  ;;  %1778 = vmatprep.mubr.bf16.mxu0 %v1912_v10 }
 0x104   : > { %v441_v9 = vpop.xlane.xlu0 %440  ;;  %1945 = vrsqrt.f32 %v657_v61  ;;  %v641_v14 = vmax.f32 %v609_v33, 0.0  ;;  %v531_v6 = vmul.f32 0.0078125, %v443_v5  ;;  %v722_v5 = vsub.f32 %v2362_v17, %v2528_v0 }
 0x105   : > { %v530_v7 = vmul.f32 0.0078125, %v441_v9  ;;  %v1691_v12 = vpack.c.bf16 %v845_v59, %v844_v54  ;;  %1947 = vrsqrt.f32 %v656_v4  ;;  %v640_v15 = vmax.f32 %v608_v8, 0.0 }
 0x106   : > { %v673_v22 = vadd.f32 1e-05, %v641_v14  ;;  %v595_v26 = vsub.f32 %v531_v6, %v563_v55  ;;  %v1914_v32 = vld [vmem:[#allocation2 + $0x40] sm:$0xff]  }
 0x107   : > { %v594_v11 = vsub.f32 %v530_v7, %v562_v60  ;;  %1731 = vst [vmem:[#allocation2 + $0x48] sm:$0xff] %v1691_v12   ;;  %v672_v29 = vadd.f32 1e-05, %v640_v15  ;;  %v475_v36 = vpop.xlane.xlu1 %474  ;;  %1794 = vmatprep.mubr.bf16.mxu1 %v1914_v32  ;;  %v723_v60 = vsub.f32 %v2359_v16, %v2521_v50  ;;  %v739_v12 = vsub.f32 %v2367_v18, %v2533_v58 }
 0x108   : > { %v473_v1 = vpop.xlane.xlu0 %472  ;;  %1949 = vrsqrt.f32 %v673_v22  ;;  %v627_v37 = vmax.f32 %v595_v26, 0.0  ;;  %v547_v31 = vmul.f32 0.0078125, %v475_v36  ;;  %v738_v16 = vsub.f32 %v2370_v19, %v2543_v62 }
 0x109   : > { %v626_v30 = vmax.f32 %v594_v11, 0.0  ;;  %1951 = vrsqrt.f32 %v672_v29  ;;  %v546_v45 = vmul.f32 0.0078125, %v473_v1  ;;  %v725_v18 = vsub.f32 %v2375_v20, %v2551_v27 }
 0x10a   : > { %v659_v48 = vadd.f32 1e-05, %v627_v37  ;;  %v611_v49 = vsub.f32 %v547_v31, %v579_v51  ;;  %v1915_v53 = vld [vmem:[#allocation2 + $0x8] sm:$0xff]   ;;  %v724_v32 = vsub.f32 %v2378_v21, %v2557_v40  ;;  %v740_v20 = vsub.f32 %v2386_v24, %v2570_v13 }
 0x10b   : > { %v658_v3 = vadd.f32 1e-05, %v626_v30  ;;  %v610_v2 = vsub.f32 %v546_v45, %v578_v52  ;;  %v351_v35 = vpop.xlane.xlu1 %350  ;;  %1779 = vmatmul.mubr.bf16.vlgmr.msra.gmra.mxu0 %v1915_v53  ;;  %v741_v45 = vsub.f32 %v2383_v23, %v2567_v63 }
 0x10c   : > { %v349_v34 = vpop.xlane.xlu0 %348  ;;  %1953 = vrsqrt.f32 %v659_v48  ;;  %v643_v55 = vmax.f32 %v611_v49, 0.0  ;;  %v2588_v29 = vmul.f32 0.0078125, %v351_v35 }
 0x10d   : > { %1955 = vrsqrt.f32 %v658_v3  ;;  %v642_v57 = vmax.f32 %v610_v2, 0.0  ;;  %v2595_v19 = vmul.f32 0.0078125, %v349_v34 }
 0x10e   : > { %v675_v59 = vadd.f32 1e-05, %v643_v55  ;;  %v1916_v54 = vld [vmem:[#allocation2 + $0x48] sm:$0xff]   ;;  %v565_v21 = vmul.f32 %v2588_v29, %v2588_v29 }
 0x10f   : > { %v674_v61 = vadd.f32 1e-05, %v642_v57  ;;  %v383_v4 = vpop.xlane.xlu1 %382  ;;  %1795 = vmatmul.mubr.bf16.vlgmr.msra.gmra.mxu1 %v1916_v54  ;;  %v564_v23 = vmul.f32 %v2595_v19, %v2595_v19 }
 0x110   : > { %v381_v33 = vpop.xlane.xlu0 %380  ;;  %1957 = vrsqrt.f32 %v675_v59  ;;  %v2600_v31 = vmul.f32 0.0078125, %v383_v4 }
 0x111   : > { %v1946_v8 = vpop.eup %1945  ;;  %1959 = vrsqrt.f32 %v674_v61  ;;  %v2610_v40 = vmul.f32 0.0078125, %v381_v33 }
 0x112   : > { %v1948_v9 = vpop.eup %1947  ;;  %v755_v10 = vmul.f32 %v1946_v8, %v723_v60  ;;  %v581_v57 = vmul.f32 %v2600_v31, %v2600_v31 }
 0x113   : > { %v754_v14 = vmul.f32 %v1948_v9, %v722_v5  ;;  %v355_v6 = vpop.xlane.xlu1 %354  ;;  %v580_v9 = vmul.f32 %v2610_v40, %v2610_v40 }
 0x114   : > { %v353_v7 = vpop.xlane.xlu0 %352  ;;  %v793_v15 = vmul.f32 %v2506_v25, %v755_v10  ;;  %v2618_v59 = vmul.f32 0.0078125, %v355_v6 }
 0x115   : > { %v1950_v22 = vpop.eup %1949  ;;  %v792_v50 = vmul.f32 %v2506_v25, %v754_v14  ;;  %v2624_v10 = vmul.f32 0.0078125, %v353_v7 }
 0x116   : > { %v1952_v26 = vpop.eup %1951  ;;  %v831_v17 = vadd.f32 %v2511_v28, %v793_v15  ;;  %v771_v0 = vmul.f32 %v1950_v22, %v739_v12 }
 0x117   : > { %v830_v11 = vadd.f32 %v2511_v28, %v792_v50  ;;  %v770_v51 = vmul.f32 %v1952_v26, %v738_v16  ;;  %v387_v36 = vpop.xlane.xlu1 %386 }
 0x118   : > { %v2590_v1 = vpop.xlane.xlu0 %384  ;;  %v809_v58 = vmul.f32 %v2506_v25, %v771_v0 }
 0x119   : > { %v1954_v62 = vpop.eup %1953  ;;  %v1656_v37 = vpack.c.bf16 %v831_v17, %v830_v11  ;;  %v808_v30 = vmul.f32 %v2506_v25, %v770_v51  ;;  %v567_v17 = vmul.f32 %v2618_v59, %v2618_v59 }
 0x11a   : > { %v1956_v52 = vpop.eup %1955  ;;  %v847_v27 = vadd.f32 %v2511_v28, %v809_v58  ;;  %v757_v48 = vmul.f32 %v1954_v62, %v725_v18  ;;  %v566_v62 = vmul.f32 %v2624_v10, %v2624_v10 }
 0x11b   : > { %1724 = vst [vmem:[#allocation2 + $0x10] sm:$0xff] %v1656_v37   ;;  %v846_v3 = vadd.f32 %v2511_v28, %v808_v30  ;;  %v756_v49 = vmul.f32 %v1956_v52, %v724_v32  ;;  %v447_v2 = vpop.xlane.xlu1 %446  ;;  %v2634_v32 = vmul.f32 0.0078125, %v387_v36 }
 0x11c   : > { %v445_v35 = vpop.xlane.xlu0 %444  ;;  %v795_v34 = vmul.f32 %v2506_v25, %v757_v48  ;;  %v533_v24 = vmul.f32 0.0078125, %v447_v2 }
 0x11d   : > { %v532_v63 = vmul.f32 0.0078125, %v445_v35  ;;  %v1958_v13 = vpop.eup %1957  ;;  %v1696_v53 = vpack.c.bf16 %v847_v27, %v846_v3  ;;  %v794_v55 = vmul.f32 %v2506_v25, %v756_v49  ;;  %v2637_v49 = vmul.f32 0.0078125, %v2590_v1 }
 0x11e   : > { %v1960_v61 = vpop.eup %1959  ;;  %v833_v4 = vadd.f32 %v2511_v28, %v795_v34  ;;  %v773_v33 = vmul.f32 %v1958_v13, %v741_v45  ;;  %v597_v54 = vsub.f32 %v533_v24, %v565_v21  ;;  %v583_v36 = vmul.f32 %v2634_v32, %v2634_v32 }
 0x11f   : > { %v596_v60 = vsub.f32 %v532_v63, %v564_v23  ;;  %1732 = vst [vmem:[#allocation2 + $0x50] sm:$0xff] %v1696_v53   ;;  %v832_v8 = vadd.f32 %v2511_v28, %v794_v55  ;;  %v772_v5 = vmul.f32 %v1960_v61, %v740_v20  ;;  %v479_v14 = vpop.xlane.xlu1 %478  ;;  %v582_v1 = vmul.f32 %v2637_v49, %v2637_v49 }
 0x120   : > { %v477_v12 = vpop.xlane.xlu0 %476  ;;  %v811_v6 = vmul.f32 %v2506_v25, %v773_v33  ;;  %v629_v15 = vmax.f32 %v597_v54, 0.0  ;;  %v549_v16 = vmul.f32 0.0078125, %v479_v14 }
 0x121   : > { %v628_v22 = vmax.f32 %v596_v60, 0.0  ;;  %v1661_v50 = vpack.c.bf16 %v833_v4, %v832_v8  ;;  %v810_v26 = vmul.f32 %v2506_v25, %v772_v5  ;;  %v548_v0 = vmul.f32 0.0078125, %v477_v12 }
 0x122   : > { %v849_v11 = vadd.f32 %v2511_v28, %v811_v6  ;;  %v661_v51 = vadd.f32 1e-05, %v629_v15  ;;  %v613_v7 = vsub.f32 %v549_v16, %v581_v57  ;;  %v1917_v45 = vld [vmem:[#allocation2 + $0x10] sm:$0xff]  }
 0x123   : > { %v660_v18 = vadd.f32 1e-05, %v628_v22  ;;  %1725 = vst [vmem:[#allocation2 + $0x18] sm:$0xff] %v1661_v50   ;;  %v848_v58 = vadd.f32 %v2511_v28, %v810_v26  ;;  %v612_v37 = vsub.f32 %v548_v0, %v580_v9  ;;  %v451_v30 = vpop.xlane.xlu1 %450  ;;  %1782 = vmatprep.mubr.bf16.mxu0 %v1917_v45  ;;  %v727_v26 = vsub.f32 %v2407_v38, %v2588_v29 }
 0x124   : > { %v449_v52 = vpop.xlane.xlu0 %448  ;;  %1961 = vrsqrt.f32 %v661_v51  ;;  %v645_v20 = vmax.f32 %v613_v7, 0.0  ;;  %v535_v27 = vmul.f32 0.0078125, %v451_v30  ;;  %v726_v0 = vsub.f32 %v2410_v39, %v2595_v19 }
 0x125   : > { %v534_v48 = vmul.f32 0.0078125, %v449_v52  ;;  %v1701_v3 = vpack.c.bf16 %v849_v11, %v848_v58  ;;  %1963 = vrsqrt.f32 %v660_v18  ;;  %v644_v21 = vmax.f32 %v612_v37, 0.0 }
 0x126   : > { %v677_v2 = vadd.f32 1e-05, %v645_v20  ;;  %v599_v35 = vsub.f32 %v535_v27, %v567_v17  ;;  %v1918_v13 = vld [vmem:[#allocation2 + $0x50] sm:$0xff]   ;;  %v742_v38 = vsub.f32 %v2418_v42, %v2610_v40 }
 0x127   : > { %v598_v34 = vsub.f32 %v534_v48, %v566_v62  ;;  %1733 = vst [vmem:[#allocation2 + $0x58] sm:$0xff] %v1701_v3   ;;  %v676_v23 = vadd.f32 1e-05, %v644_v21  ;;  %v483_v24 = vpop.xlane.xlu1 %482  ;;  %1798 = vmatprep.mubr.bf16.mxu1 %v1918_v13  ;;  %v743_v62 = vsub.f32 %v2415_v41, %v2600_v31  ;;  %v729_v41 = vsub.f32 %v2423_v43, %v2618_v59 }
 0x128   : > { %v481_v63 = vpop.xlane.xlu0 %480  ;;  %1965 = vrsqrt.f32 %v677_v2  ;;  %v631_v53 = vmax.f32 %v599_v35, 0.0  ;;  %v551_v57 = vmul.f32 0.0078125, %v483_v24  ;;  %v728_v21 = vsub.f32 %v2426_v44, %v2624_v10 }
 0x129   : > { %v630_v55 = vmax.f32 %v598_v34, 0.0  ;;  %1967 = vrsqrt.f32 %v676_v23  ;;  %v550_v61 = vmul.f32 0.0078125, %v481_v63  ;;  %v745_v23 = vsub.f32 %v2431_v46, %v2634_v32 }
 0x12a   : > { %v663_v4 = vadd.f32 1e-05, %v631_v53  ;;  %v615_v54 = vsub.f32 %v551_v57, %v583_v36  ;;  %v1919_v9 = vld [vmem:[#allocation2 + $0x18] sm:$0xff]   ;;  %v744_v43 = vsub.f32 %v2434_v47, %v2637_v49 }
 0x12b   : > { %v662_v33 = vadd.f32 1e-05, %v630_v55  ;;  %v614_v60 = vsub.f32 %v550_v61, %v582_v1  ;;  %v359_v8 = vpop.xlane.xlu1 %358  ;;  %1783 = vmatmul.mubr.bf16.gmra.mxu0 %v1919_v9 }
 0x12c   : > { %v357_v5 = vpop.xlane.xlu0 %356  ;;  %1969 = vrsqrt.f32 %v663_v4  ;;  %v647_v14 = vmax.f32 %v615_v54, 0.0  ;;  %v2655_v27 = vmul.f32 0.0078125, %v359_v8 }
 0x12d   : > { %1971 = vrsqrt.f32 %v662_v33  ;;  %v646_v12 = vmax.f32 %v614_v60, 0.0  ;;  %v2662_v42 = vmul.f32 0.0078125, %v357_v5 }
 0x12e   : > { %v679_v6 = vadd.f32 1e-05, %v647_v14  ;;  %v1920_v50 = vld [vmem:[#allocation2 + $0x58] sm:$0xff]   ;;  %v569_v44 = vmul.f32 %v2655_v27, %v2655_v27 }
 0x12f   : > { %v678_v15 = vadd.f32 1e-05, %v646_v12  ;;  %v391_v22 = vpop.xlane.xlu1 %390  ;;  %1799 = vmatmul.mubr.bf16.gmra.mxu1 %v1920_v50  ;;  %v568_v46 = vmul.f32 %v2662_v42, %v2662_v42 }
 0x130   : > { %v389_v16 = vpop.xlane.xlu0 %388  ;;  %1973 = vrsqrt.f32 %v679_v6  ;;  %v2667_v34 = vmul.f32 0.0078125, %v391_v22 }
 0x131   : > { %v1962_v17 = vpop.eup %1961  ;;  %1975 = vrsqrt.f32 %v678_v15  ;;  %v2677_v10 = vmul.f32 0.0078125, %v389_v16 }
 0x132   : > { %v1964_v11 = vpop.eup %1963  ;;  %v759_v51 = vmul.f32 %v1962_v17, %v727_v26  ;;  %v585_v4 = vmul.f32 %v2667_v34, %v2667_v34 }
 0x133   : > { %v758_v18 = vmul.f32 %v1964_v11, %v726_v0  ;;  %v363_v7 = vpop.xlane.xlu1 %362  ;;  %v584_v6 = vmul.f32 %v2677_v10, %v2677_v10 }
 0x134   : > { %v361_v58 = vpop.xlane.xlu0 %360  ;;  %v797_v37 = vmul.f32 %v2506_v25, %v759_v51  ;;  %v2685_v33 = vmul.f32 0.0078125, %v363_v7 }
 0x135   : > { %v1966_v30 = vpop.eup %1965  ;;  %v796_v29 = vmul.f32 %v2506_v25, %v758_v18  ;;  %v2691_v15 = vmul.f32 0.0078125, %v361_v58 }
 0x136   : > { %v1968_v52 = vpop.eup %1967  ;;  %v835_v39 = vadd.f32 %v2511_v28, %v797_v37  ;;  %v775_v19 = vmul.f32 %v1966_v30, %v743_v62  ;;  %v571_v18 = vmul.f32 %v2685_v33, %v2685_v33 }
 0x137   : > { %v834_v45 = vadd.f32 %v2511_v28, %v796_v29  ;;  %v774_v20 = vmul.f32 %v1968_v52, %v742_v38  ;;  %v395_v48 = vpop.xlane.xlu1 %394  ;;  %v570_v29 = vmul.f32 %v2691_v15, %v2691_v15 }
 0x138   : > { %v2657_v3 = vpop.xlane.xlu0 %392  ;;  %v813_v31 = vmul.f32 %v2506_v25, %v775_v19  ;;  %v2701_v52 = vmul.f32 0.0078125, %v395_v48 }
 0x139   : > { %v1970_v40 = vpop.eup %1969  ;;  %v1666_v2 = vpack.c.bf16 %v835_v39, %v834_v45  ;;  %v812_v35 = vmul.f32 %v2506_v25, %v774_v20 }
 0x13a   : > { %v1972_v36 = vpop.eup %1971  ;;  %v851_v59 = vadd.f32 %v2511_v28, %v813_v31  ;;  %v761_v24 = vmul.f32 %v1970_v40, %v729_v41  ;;  %v587_v48 = vmul.f32 %v2701_v52, %v2701_v52 }
 0x13b   : > { %1726 = vst [vmem:[#allocation2 + $0x20] sm:$0xff] %v1666_v2   ;;  %v850_v63 = vadd.f32 %v2511_v28, %v812_v35  ;;  %v760_v13 = vmul.f32 %v1972_v36, %v728_v21  ;;  %v455_v53 = vpop.xlane.xlu1 %454  ;;  %v2704_v2 = vmul.f32 0.0078125, %v2657_v3 }
 0x13c   : > { %v453_v55 = vpop.xlane.xlu0 %452  ;;  %v799_v57 = vmul.f32 %v2506_v25, %v761_v24  ;;  %v537_v47 = vmul.f32 0.0078125, %v455_v53 }
 0x13d   : > { %v536_v32 = vmul.f32 0.0078125, %v453_v55  ;;  %v1974_v49 = vpop.eup %1973  ;;  %v1706_v1 = vpack.c.bf16 %v851_v59, %v850_v63  ;;  %v798_v61 = vmul.f32 %v2506_v25, %v760_v13  ;;  %v586_v3 = vmul.f32 %v2704_v2, %v2704_v2 }
 0x13e   : > { %v1976_v54 = vpop.eup %1975  ;;  %v837_v60 = vadd.f32 %v2511_v28, %v799_v57  ;;  %v777_v8 = vmul.f32 %v1974_v49, %v745_v23  ;;  %v601_v5 = vsub.f32 %v537_v47, %v569_v44 }
 0x13f   : > { %v600_v9 = vsub.f32 %v536_v32, %v568_v46  ;;  %1734 = vst [vmem:[#allocation2 + $0x60] sm:$0xff] %v1706_v1   ;;  %v836_v14 = vadd.f32 %v2511_v28, %v798_v61  ;;  %v776_v12 = vmul.f32 %v1976_v54, %v744_v43  ;;  %v487_v22 = vpop.xlane.xlu1 %486 }
 0x140   : > { %v485_v16 = vpop.xlane.xlu0 %484  ;;  %v815_v50 = vmul.f32 %v2506_v25, %v777_v8  ;;  %v633_v26 = vmax.f32 %v601_v5, 0.0  ;;  %v553_v0 = vmul.f32 0.0078125, %v487_v22  ;;  %v731_v5 = vsub.f32 %v2455_v56, %v2655_v27 }
 0x141   : > { %v632_v17 = vmax.f32 %v600_v9, 0.0  ;;  %v1671_v11 = vpack.c.bf16 %v837_v60, %v836_v14  ;;  %v814_v51 = vmul.f32 %v2506_v25, %v776_v12  ;;  %v552_v7 = vmul.f32 0.0078125, %v485_v16  ;;  %v1993_v14 = vld [vmem:[%s2300_s11 + $0x60] sm:$0xff] }
 0x142   : > { %v853_v62 = vadd.f32 %v2511_v28, %v815_v50  ;;  %v665_v37 = vadd.f32 1e-05, %v633_v26  ;;  %v617_v58 = vsub.f32 %v553_v0, %v585_v4  ;;  %v1921_v20 = vld [vmem:[#allocation2 + $0x20] sm:$0xff]   ;;  %v730_v12 = vsub.f32 %v1993_v14, %v2662_v42  ;;  %v1994_v50 = vld [vmem:[%s2300_s11 + $0xe8] sm:$0xff] }
 0x143   : > { %v664_v30 = vadd.f32 1e-05, %v632_v17  ;;  %1727 = vst [vmem:[#allocation2 + $0x28] sm:$0xff] %v1671_v11   ;;  %v852_v38 = vadd.f32 %v2511_v28, %v814_v51  ;;  %v616_v39 = vsub.f32 %v552_v7, %v584_v6  ;;  %v459_v19 = vpop.xlane.xlu1 %458  ;;  %1786 = vmatprep.mubr.bf16.mxu0 %v1921_v20  ;;  %v747_v26 = vsub.f32 %v1994_v50, %v2667_v34  ;;  %v1995_v11 = vld [vmem:[%s2300_s11 + $0xe0] sm:$0xff] }
 0x144   : > { %v457_v45 = vpop.xlane.xlu0 %456  ;;  %1977 = vrsqrt.f32 %v665_v37  ;;  %v649_v41 = vmax.f32 %v617_v58, 0.0  ;;  %v539_v31 = vmul.f32 0.0078125, %v459_v19  ;;  %v746_v56 = vsub.f32 %v1995_v11, %v2677_v10  ;;  %v1996_v37 = vld [vmem:[%s2300_s11 + $0x78] sm:$0xff] }
 0x145   : > { %v538_v40 = vmul.f32 0.0078125, %v457_v45  ;;  %v1711_v21 = vpack.c.bf16 %v853_v62, %v852_v38  ;;  %1979 = vrsqrt.f32 %v664_v30  ;;  %v648_v35 = vmax.f32 %v616_v39, 0.0  ;;  %v1997_v38 = vld [vmem:[%s2300_s11 + $0x70] sm:$0xff] }
 0x146   : > { %v681_v36 = vadd.f32 1e-05, %v649_v41  ;;  %v603_v23 = vsub.f32 %v539_v31, %v571_v18  ;;  %v1922_v13 = vld [vmem:[#allocation2 + $0x60] sm:$0xff]   ;;  %v733_v30 = vsub.f32 %v1996_v37, %v2685_v33  ;;  %v732_v10 = vsub.f32 %v1997_v38, %v2691_v15 }
 0x147   : > { %v602_v43 = vsub.f32 %v538_v40, %v570_v29  ;;  %1735 = vst [vmem:[#allocation2 + $0x68] sm:$0xff] %v1711_v21   ;;  %v680_v59 = vadd.f32 1e-05, %v648_v35  ;;  %v491_v24 = vpop.xlane.xlu1 %490  ;;  %1802 = vmatprep.mubr.bf16.mxu1 %v1922_v13  ;;  %v1998_v40 = vld [vmem:[%s2300_s11 + $0xf8] sm:$0xff] }
 0x148   : > { %v489_v63 = vpop.xlane.xlu0 %488  ;;  %1981 = vrsqrt.f32 %v681_v36  ;;  %v635_v44 = vmax.f32 %v603_v23, 0.0  ;;  %v555_v55 = vmul.f32 0.0078125, %v491_v24  ;;  %v749_v33 = vsub.f32 %v1998_v40, %v2701_v52  ;;  %v1999_v36 = vld [vmem:[%s2300_s11 + $0xf0] sm:$0xff]  ;;  %s2060_s11 = scalar_lea.vmem %s2059_s10, 8192 }
 0x149   : > { %v634_v53 = vmax.f32 %v602_v43, 0.0  ;;  %1983 = vrsqrt.f32 %v680_v59  ;;  %v554_v57 = vmul.f32 0.0078125, %v489_v63  ;;  %v748_v15 = vsub.f32 %v1999_v36, %v2704_v2  ;;  %p2062_p2 = scmp.lt.s32.totalorder %s2060_s11, %s2054_s6 }
 0x14a   : > { %v667_v46 = vadd.f32 1e-05, %v635_v44  ;;  %v619_v32 = vsub.f32 %v555_v55, %v587_v48  ;;  %v1923_v1 = vld [vmem:[#allocation2 + $0x28] sm:$0xff]  }
 0x14b   : > { %v666_v47 = vadd.f32 1e-05, %v634_v53  ;;  %v618_v49 = vsub.f32 %v554_v57, %v586_v3  ;;  %1787 = vmatmul.mubr.bf16.gmra.mxu0 %v1923_v1  ;;  %p2063_p3 = por %p2062_p2, %p2061_p0 }
 0x14c   : > { %1985 = vrsqrt.f32 %v667_v46  ;;  %v651_v61 = vmax.f32 %v619_v32, 0.0 }
 0x14d   : > { %1987 = vrsqrt.f32 %v666_v47  ;;  %v650_v4 = vmax.f32 %v618_v49, 0.0  ;;  %p2064_p5 = pnand %p2063_p3, %p2057_p12 }
 0x14e   : > { %v683_v54 = vadd.f32 1e-05, %v651_v61  ;;  %v1924_v8 = vld [vmem:[#allocation2 + $0x68] sm:$0xff]  }
 0x14f   : > { %v682_v60 = vadd.f32 1e-05, %v650_v4  ;;  %1803 = vmatmul.mubr.bf16.gmra.mxu1 %v1924_v8 }
 0x150   : > { %1989 = vrsqrt.f32 %v683_v54 }
 0x151   : > { %v1978_v9 = vpop.eup %1977  ;;  %1991 = vrsqrt.f32 %v682_v60 }
 0x152   : > { %v1980_v6 = vpop.eup %1979  ;;  %v763_v22 = vmul.f32 %v1978_v9, %v731_v5 }
 0x153   : > { %v762_v16 = vmul.f32 %v1980_v6, %v730_v12 }
 0x154   : > { %v801_v17 = vmul.f32 %v2506_v25, %v763_v22 }
 0x155   : > { %v1982_v0 = vpop.eup %1981  ;;  %v800_v27 = vmul.f32 %v2506_v25, %v762_v16 }
 0x156   : > { %v1984_v51 = vpop.eup %1983  ;;  %v839_v42 = vadd.f32 %v2511_v28, %v801_v17  ;;  %v779_v18 = vmul.f32 %v1982_v0, %v747_v26 }
 0x157   : > { %v838_v7 = vadd.f32 %v2511_v28, %v800_v27  ;;  %v778_v62 = vmul.f32 %v1984_v51, %v746_v56 }
 0x158   : > { %v817_v34 = vmul.f32 %v2506_v25, %v779_v18 }
 0x159   : > { %v1986_v58 = vpop.eup %1985  ;;  %v1676_v29 = vpack.c.bf16 %v839_v42, %v838_v7  ;;  %v816_v39 = vmul.f32 %v2506_v25, %v778_v62 }
 0x15a   : > { %v1988_v19 = vpop.eup %1987  ;;  %v855_v45 = vadd.f32 %v2511_v28, %v817_v34  ;;  %v765_v20 = vmul.f32 %v1986_v58, %v733_v30 }
 0x15b   : > { %1728 = vst [vmem:[#allocation2 + $0x30] sm:$0xff] %v1676_v29   ;;  %v854_v41 = vadd.f32 %v2511_v28, %v816_v39  ;;  %v764_v31 = vmul.f32 %v1988_v19, %v732_v10 }
 0x15c   : > { %v803_v21 = vmul.f32 %v2506_v25, %v765_v20 }
 0x15d   : > { %v1990_v35 = vpop.eup %1989  ;;  %v1716_v23 = vpack.c.bf16 %v855_v45, %v854_v41  ;;  %v802_v43 = vmul.f32 %v2506_v25, %v764_v31 }
 0x15e   : > { %v1992_v48 = vpop.eup %1991  ;;  %v841_v59 = vadd.f32 %v2511_v28, %v803_v21  ;;  %v781_v24 = vmul.f32 %v1990_v35, %v749_v33 }
 0x15f   : > { %1736 = vst [vmem:[#allocation2 + $0x70] sm:$0xff] %v1716_v23   ;;  %v840_v63 = vadd.f32 %v2511_v28, %v802_v43  ;;  %v780_v13 = vmul.f32 %v1992_v48, %v748_v15 }
 0x160   : > { %v819_v44 = vmul.f32 %v2506_v25, %v781_v24 }
 0x161   : > { %v1681_v52 = vpack.c.bf16 %v841_v59, %v840_v63  ;;  %v818_v53 = vmul.f32 %v2506_v25, %v780_v13  ;;  %v2745_v25 = vld [vmem:[%s2874_s4] ss:$0 sm:$0xff] }
 0x162   : > { %v857_v55 = vadd.f32 %v2511_v28, %v819_v44  ;;  %v1925_v3 = vld [vmem:[#allocation2 + $0x30] sm:$0xff]  }
 0x163   : > { %1729 = vst [vmem:[#allocation2 + $0x38] sm:$0xff] %v1681_v52   ;;  %v856_v2 = vadd.f32 %v2511_v28, %v818_v53  ;;  %1790 = vmatprep.mubr.bf16.mxu0 %v1925_v3 }
 0x165   : > { %v1721_v57 = vpack.c.bf16 %v857_v55, %v856_v2 }
 0x166   : > { %v1926_v46 = vld [vmem:[#allocation2 + $0x70] sm:$0xff]  }
 0x167   : > { %1737 = vst [vmem:[#allocation2 + $0x78] sm:$0xff] %v1721_v57   ;;  %1806 = vmatprep.mubr.bf16.mxu1 %v1926_v46 }
 0x16a   : > { %v1927_v47 = vld [vmem:[#allocation2 + $0x38] sm:$0xff]  }
 0x16b   : > { %1791 = vmatmul.mubr.bf16.gmra.mxu0 %v1927_v47 }
 0x16e   : > { %v1928_v32 = vld [vmem:[#allocation2 + $0x78] sm:$0xff]  }
 0x16f   : > { %1807 = vmatmul.mubr.bf16.gmra.mxu1 %v1928_v32 }
 0x1cb   : > { %v1780_v49 = vpop.f32.mrf.mxu0 }
 0x1cc   : > { %v1260_v1 = vadd.f32 %v1780_v49, %v2745_v25 }
 0x1cd   : > { %v1251_v61 = vpop.f32.mrf.mxu0 }
 0x1ce   : > { %1380 = vst [vmem:[%s2750_s14 + $0x10] sm:$0xff] %v1260_v1  ;;  %v1252_v28 = vadd.f32 %v2745_v25, %v1251_v61 }
 0x1cf   : > { %v1781_v4 = vpop.f32.mrf.mxu0  ;;  %v1796_v54 = vpop.f32.mrf.mxu1 }
 0x1d0   : > { %1378 = vst [vmem:[%s2750_s14] sm:$0xff] %v1252_v28  ;;  %v1263_v60 = vadd.f32 %v1781_v4, %v2745_v25  ;;  %v1324_v8 = vadd.f32 %v1796_v54, %v2745_v25 }
 0x1d1   : > { %v1254_v5 = vpop.f32.mrf.mxu0  ;;  %v1315_v9 = vpop.f32.mrf.mxu1 }
 0x1d2   : > { %1381 = vst [vmem:[%s2750_s14 + $0x18] sm:$0xff] %v1263_v60  ;;  %1396 = vst [vmem:[%s2750_s14 + $0x90] sm:$0xff] %v1324_v8  ;;  %v1255_v14 = vadd.f32 %v2745_v25, %v1254_v5  ;;  %v1316_v12 = vadd.f32 %v2745_v25, %v1315_v9 }
 0x1d3   : > { %v1797_v6 = vpop.f32.mrf.mxu1 }
 0x1d4   : > { %1379 = vst [vmem:[%s2750_s14 + $0x8] sm:$0xff] %v1255_v14  ;;  %1394 = vst [vmem:[%s2750_s14 + $0x80] sm:$0xff] %v1316_v12  ;;  %v1327_v22 = vadd.f32 %v1797_v6, %v2745_v25 }
 0x1d5   : > { %v1318_v16 = vpop.f32.mrf.mxu1 }
 0x1d6   : > { %1397 = vst [vmem:[%s2750_s14 + $0x98] sm:$0xff] %v1327_v22  ;;  %v1319_v50 = vadd.f32 %v2745_v25, %v1318_v16 }
 0x1d8   : > { %1395 = vst [vmem:[%s2750_s14 + $0x88] sm:$0xff] %v1319_v50 }
 0x1eb   : > { %v1784_v26 = vpop.f32.mrf.mxu0 }
 0x1ec   : > { %v1276_v17 = vadd.f32 %v1784_v26, %v2745_v25 }
 0x1ed   : > { %v1267_v0 = vpop.f32.mrf.mxu0 }
 0x1ee   : > { %1384 = vst [vmem:[%s2750_s14 + $0x30] sm:$0xff] %v1276_v17  ;;  %v1268_v11 = vadd.f32 %v2745_v25, %v1267_v0 }
 0x1ef   : > { %v1785_v56 = vpop.f32.mrf.mxu0  ;;  %v1800_v27 = vpop.f32.mrf.mxu1 }
 0x1f0   : > { %1382 = vst [vmem:[%s2750_s14 + $0x20] sm:$0xff] %v1268_v11  ;;  %v1279_v51 = vadd.f32 %v1785_v56, %v2745_v25  ;;  %v1340_v42 = vadd.f32 %v1800_v27, %v2745_v25 }
 0x1f1   : > { %v1270_v18 = vpop.f32.mrf.mxu0  ;;  %v1331_v7 = vpop.f32.mrf.mxu1 }
 0x1f2   : > { %1385 = vst [vmem:[%s2750_s14 + $0x38] sm:$0xff] %v1279_v51  ;;  %1400 = vst [vmem:[%s2750_s14 + $0xb0] sm:$0xff] %v1340_v42  ;;  %v1271_v62 = vadd.f32 %v2745_v25, %v1270_v18  ;;  %v1332_v37 = vadd.f32 %v2745_v25, %v1331_v7 }
 0x1f3   : > { %v1801_v30 = vpop.f32.mrf.mxu1 }
 0x1f4   : > { %1383 = vst [vmem:[%s2750_s14 + $0x28] sm:$0xff] %v1271_v62  ;;  %1398 = vst [vmem:[%s2750_s14 + $0xa0] sm:$0xff] %v1332_v37  ;;  %v1343_v34 = vadd.f32 %v1801_v30, %v2745_v25 }
 0x1f5   : > { %v1334_v58 = vpop.f32.mrf.mxu1 }
 0x1f6   : > { %1401 = vst [vmem:[%s2750_s14 + $0xb8] sm:$0xff] %v1343_v34  ;;  %v1335_v38 = vadd.f32 %v2745_v25, %v1334_v58 }
 0x1f8   : > { %1399 = vst [vmem:[%s2750_s14 + $0xa8] sm:$0xff] %v1335_v38 }
 0x20b   : > { %v1788_v10 = vpop.f32.mrf.mxu0 }
 0x20c   : > { %v1292_v29 = vadd.f32 %v1788_v10, %v2745_v25 }
 0x20d   : > { %v1283_v39 = vpop.f32.mrf.mxu0 }
 0x20e   : > { %1388 = vst [vmem:[%s2750_s14 + $0x50] sm:$0xff] %v1292_v29  ;;  %v1284_v19 = vadd.f32 %v2745_v25, %v1283_v39 }
 0x20f   : > { %v1789_v45 = vpop.f32.mrf.mxu0  ;;  %v1804_v20 = vpop.f32.mrf.mxu1 }
 0x210   : > { %1386 = vst [vmem:[%s2750_s14 + $0x40] sm:$0xff] %v1284_v19  ;;  %v1295_v41 = vadd.f32 %v1789_v45, %v2745_v25  ;;  %v1356_v31 = vadd.f32 %v1804_v20, %v2745_v25 }
 0x211   : > { %v1286_v40 = vpop.f32.mrf.mxu0  ;;  %v1347_v33 = vpop.f32.mrf.mxu1 }
 0x212   : > { %1389 = vst [vmem:[%s2750_s14 + $0x58] sm:$0xff] %v1295_v41  ;;  %1404 = vst [vmem:[%s2750_s14 + $0xd0] sm:$0xff] %v1356_v31  ;;  %v1287_v21 = vadd.f32 %v2745_v25, %v1286_v40  ;;  %v1348_v35 = vadd.f32 %v2745_v25, %v1347_v33 }
 0x213   : > { %v1805_v36 = vpop.f32.mrf.mxu1 }
 0x214   : > { %1387 = vst [vmem:[%s2750_s14 + $0x48] sm:$0xff] %v1287_v21  ;;  %1402 = vst [vmem:[%s2750_s14 + $0xc0] sm:$0xff] %v1348_v35  ;;  %v1359_v15 = vadd.f32 %v1805_v36, %v2745_v25 }
 0x215   : > { %v1350_v23 = vpop.f32.mrf.mxu1 }
 0x216   : > { %1405 = vst [vmem:[%s2750_s14 + $0xd8] sm:$0xff] %v1359_v15  ;;  %v1351_v43 = vadd.f32 %v2745_v25, %v1350_v23 }
 0x218   : > { %1403 = vst [vmem:[%s2750_s14 + $0xc8] sm:$0xff] %v1351_v43 }
 0x22b   : > { %v1792_v48 = vpop.f32.mrf.mxu0 }
 0x22c   : > { %v1308_v59 = vadd.f32 %v1792_v48, %v2745_v25 }
 0x22d   : > { %v1299_v24 = vpop.f32.mrf.mxu0 }
 0x22e   : > { %1392 = vst [vmem:[%s2750_s14 + $0x70] sm:$0xff] %v1308_v59  ;;  %v1300_v63 = vadd.f32 %v2745_v25, %v1299_v24 }
 0x22f   : > { %v1793_v13 = vpop.f32.mrf.mxu0  ;;  %v1808_v44 = vpop.f32.mrf.mxu1 }
 0x230   : > { %1390 = vst [vmem:[%s2750_s14 + $0x60] sm:$0xff] %v1300_v63  ;;  %v1311_v52 = vadd.f32 %v1793_v13, %v2745_v25  ;;  %v1372_v53 = vadd.f32 %v1808_v44, %v2745_v25 }
 0x231   : > { %v1302_v55 = vpop.f32.mrf.mxu0  ;;  %v1363_v3 = vpop.f32.mrf.mxu1 }
 0x232   : > { %1393 = vst [vmem:[%s2750_s14 + $0x78] sm:$0xff] %v1311_v52  ;;  %1408 = vst [vmem:[%s2750_s14 + $0xf0] sm:$0xff] %v1372_v53  ;;  %v1303_v2 = vadd.f32 %v2745_v25, %v1302_v55  ;;  %v1364_v57 = vadd.f32 %v2745_v25, %v1363_v3 }
 0x233   : > { %v1809_v46 = vpop.f32.mrf.mxu1 }
 0x234   : > { %1391 = vst [vmem:[%s2750_s14 + $0x68] sm:$0xff] %v1303_v2  ;;  %1406 = vst [vmem:[%s2750_s14 + $0xe0] sm:$0xff] %v1364_v57  ;;  %v1375_v47 = vadd.f32 %v1809_v46, %v2745_v25 }
 0x235   : > { %v1366_v32 = vpop.f32.mrf.mxu1 }
 0x236   : > { %1409 = vst [vmem:[%s2750_s14 + $0xf8] sm:$0xff] %v1375_v47  ;;  %v1367_v49 = vadd.f32 %v2745_v25, %v1366_v32 }
 0x238   : > { %1407 = vst [vmem:[%s2750_s14 + $0xe8] sm:$0xff] %v1367_v49 }
 0x239   : > { %2067 = shalt.err (!%p2064_p5)
}
 0x23a   : > { %s2068_s3 = scalar_lea.hbm %s2817_s16, 4096  ;;  %s2072_s30 = scalar_lea.hbm %s2875_s5, 8192 }
 0x23b   : > { %p2069_p7 = scmp.ne.s32.totalorder %s2817_s16, %s2068_s3  ;;  %p2073_p9 = scmp.lt.s32.totalorder %s2817_s16, %s2875_s5 }
 0x23c   : > { %p2074_p11 = scmp.lt.s32.totalorder %s2072_s30, %s2068_s3 }
 0x23d   : > { %p2070_p6 = pnand %p2069_p7, %p2266_p13 }
 0x23e   : > { %p2075_p10 = por %p2074_p11, %p2073_p9 }
 0x23f   : > { %p2071_p4 = pneg %p2070_p6 }
 0x241   : > { %p2076_p1 = pnand %p2075_p10, %p2071_p4 }
 0x243   : > { %2079 = shalt.err (!%p2076_p1)
}
 0x244   : > { %s2147_s14 = smov 128   ;;  %s2148_s27 = smov 8  }
 0x245   : > { %1832 = dma.vmem_to_hbm [thread:$0]  (%p2266_p13), %s2819_s24, 4096, %s2817_s16, %s1411_s21, %s2147_s14, %s2147_s14, %s2148_s27  }
 0x246 PF: > { %s1440_s15 = sand.u32 1, %s2118_s18   ;;  %p2891_p8 = scmp.ne.s32.totalorder %s2882_s29, 0 }
 0x247   : > { %p2892_p12 = scmp.ge.s32.totalorder %s2138_s23, 2  ;;  %s1441_s8 = scalar_lea.sflag [#allocation5], %s1440_s15 }
 0x249   : > { %p1843_p0 = pnand %p2892_p12, %p2891_p8 }
 0x24b   : > { %p1844_p2 = pneg %p1843_p0 }
 0x24d   : > { %2113 = dma.done.wait (%p1844_p2), %s1441_s8, 4096  }
 0x24e   : > { %2115 = vsyncadd (%p1844_p2), %s1441_s8, 4294963200  ;;  %s22_s23 = sadd.s32 1, %s2138_s23   ;;  %s2893_s17 = sld [smem:[#allocation12_spill]] }
 0x24f   : > { %p19_p3 = scmp.ge.s32.totalorder %s22_s23, 4   ;;  %s2894_s18 = smov %s2122_s19 }
 0x250   : > { %s2895_s19 = smov %s2126_s20  ;;  %s2896_s20 = smov %s2275_s7 }
 0x251   : > { %s2897_s21 = smov %s2134_s22  ;;  %21 = sbr.rel (!%p19_p3) target bundleno = 9 (0x9), region = 97 }
 0x254   : > { %s2898_s22 = smov %s2893_s17 }
 0x256   :  { %1446 = vsyncpa [#allocation4], 1 }
 0x257   :  { %1448 = vsyncpa [#allocation4 + $0x1], 1 }
 0x258   :  { %1449 = vsyncpa [#allocation7], 1 }
 0x259   :  { %1450 = vsyncpa [#allocation5], 1 }
 0x25a   :  { %1452 = vsyncpa [#allocation5 + $0x1], 1 }

</bundles_post_ra>
